<compile_context>
chip_gen: v5e
topology: v5e:2x2
jax: 0.10.0
libtpu: 0.0.40
codegen_flags: <defaults>
</compile_context>

<pallas_src>
import functools

import jax
import jax.numpy as jnp
from jax import lax
from jax.experimental import pallas as pl
from jax.experimental.pallas import tpu as pltpu


def bigru_kernel(x_ref, wx_ref, bx_ref, whf_ref, bhf_ref, whb_ref, bhb_ref,
                 out_f_ref, out_b_ref, hTf_ref, hTb_ref, gx_ref):
    # x_ref:    (T*B, I)   time-major flattened embeddings
    # wx_ref:   (I, 6H)    [W_ih_fwd^T | W_ih_bwd^T]
    # bx_ref:   (1, 6H)    [b_ih_fwd | b_ih_bwd]
    # whf_ref:  (H, 3H)    W_hh_fwd^T      bhf_ref: (1, 3H)
    # whb_ref:  (H, 3H)    W_hh_bwd^T      bhb_ref: (1, 3H)
    # out_f_ref / out_b_ref: (T*B, H)  per-timestep hidden states (time-major)
    # hTf_ref / hTb_ref:     (B, H)    final hidden states per direction
    # gx_ref:   (T*B, 6H)  VMEM scratch for the precomputed input projections
    B, H = hTf_ref.shape
    TB, I = x_ref.shape
    T = TB // B
    H3 = 3 * H

    # ---- Phase 1: one dense MXU matmul for all timesteps & both directions ----
    gx_ref[...] = (jnp.dot(x_ref[...], wx_ref[...],
                           preferred_element_type=jnp.float32) + bx_ref[...])

    # Hoist recurrent weights/biases out of the time loop.
    wh_f = whf_ref[...]
    bh_f = bhf_ref[...]
    wh_b = whb_ref[...]
    bh_b = bhb_ref[...]

    def gru_cell(gx, h, wh, bh):
        # gx: (B, 3H) precomputed W_ih x_t + b_ih, gate order [r | z | n]
        gh = jnp.dot(h, wh, preferred_element_type=jnp.float32) + bh
        r = jax.nn.sigmoid(gx[:, 0:H] + gh[:, 0:H])
        z = jax.nn.sigmoid(gx[:, H:2 * H] + gh[:, H:2 * H])
        n = jnp.tanh(gx[:, 2 * H:3 * H] + r * gh[:, 2 * H:3 * H])
        return (1.0 - z) * n + z * h

    # ---- Phase 2: sequential recurrence, both directions per step ----
    def step(s, carry):
        h_f, h_b = carry
        t_b = T - 1 - s
        gxf = gx_ref[pl.ds(s * B, B), 0:H3]          # forward dir reads x_s
        gxb = gx_ref[pl.ds(t_b * B, B), H3:2 * H3]   # backward dir reads x_{T-1-s}
        h_f = gru_cell(gxf, h_f, wh_f, bh_f)
        h_b = gru_cell(gxb, h_b, wh_b, bh_b)
        out_f_ref[pl.ds(s * B, B), :] = h_f.astype(out_f_ref.dtype)
        out_b_ref[pl.ds(t_b * B, B), :] = h_b.astype(out_b_ref.dtype)
        return h_f, h_b

    h0 = jnp.zeros((B, H), jnp.float32)
    h_f, h_b = lax.fori_loop(0, T, step, (h0, h0), unroll=True)

    hTf_ref[...] = h_f.astype(hTf_ref.dtype)
    hTb_ref[...] = h_b.astype(hTb_ref.dtype)


def bidir_encoder_forward(embed_seq,
                          w_ih_f, w_hh_f, b_ih_f, b_hh_f,
                          w_ih_b, w_hh_b, b_ih_b, b_hh_b):
    """embed_seq: (B, T, I). Weights follow PyTorch nn.GRU layout:
    w_ih_*: (3H, I), w_hh_*: (3H, H), biases: (3H,), gate order [r, z, n]."""
    B, T, I = embed_seq.shape
    H = w_hh_f.shape[1]

    # Plain-JAX glue: dropout == identity (inference); flatten time-major;
    # pre-concatenate / transpose weights so the kernel does pure 2-D dots.
    x_flat = jnp.swapaxes(embed_seq, 0, 1).reshape(T * B, I)          # (T*B, I)
    wx = jnp.concatenate([w_ih_f.T, w_ih_b.T], axis=1)                # (I, 6H)
    bx = jnp.concatenate([b_ih_f, b_ih_b]).reshape(1, 6 * H)          # (1, 6H)
    wh_f = w_hh_f.T                                                   # (H, 3H)
    wh_b = w_hh_b.T
    bh_f = b_hh_f.reshape(1, 3 * H)
    bh_b = b_hh_b.reshape(1, 3 * H)

    flops = 2 * T * B * I * 6 * H + T * 2 * (2 * B * H * 3 * H)
    transcendentals = T * 2 * B * 3 * H
    bytes_accessed = 4 * (T * B * I + I * 6 * H + 2 * H * 3 * H
                          + 2 * T * B * H + 2 * B * H)

    vmem = pl.BlockSpec(memory_space=pltpu.MemorySpace.VMEM)
    out_f, out_b, hT_f, hT_b = pl.pallas_call(
        bigru_kernel,
        out_shape=(jax.ShapeDtypeStruct((T * B, H), jnp.float32),
                   jax.ShapeDtypeStruct((T * B, H), jnp.float32),
                   jax.ShapeDtypeStruct((B, H), jnp.float32),
                   jax.ShapeDtypeStruct((B, H), jnp.float32)),
        in_specs=[vmem] * 7,
        out_specs=(vmem, vmem, vmem, vmem),
        scratch_shapes=[pltpu.VMEM((T * B, 6 * H), jnp.float32)],
        compiler_params=pltpu.CompilerParams(vmem_limit_bytes=32 * 1024 * 1024),
        cost_estimate=pl.CostEstimate(flops=flops,
                                      transcendentals=transcendentals,
                                      bytes_accessed=bytes_accessed),
    )(x_flat, wx, bx, wh_f, bh_f, wh_b, bh_b)

    outputs = jnp.concatenate([out_f.reshape(T, B, H), out_b.reshape(T, B, H)],
                              axis=-1)                                # (T, B, 2H)
    outputs = jnp.swapaxes(outputs, 0, 1)                             # (B, T, 2H)
    state = jnp.stack([hT_f, hT_b], axis=0)                           # (2, B, H)
    return outputs, state


def bidir_gru_reference(embed_seq,
                        w_ih_f, w_hh_f, b_ih_f, b_hh_f,
                        w_ih_b, w_hh_b, b_ih_b, b_hh_b):
    """Pure-JAX reference mirroring PyTorch nn.GRU(bidirectional, batch_first)."""
    B, T, I = embed_seq.shape
    H = w_hh_f.shape[1]

    def run(x_dir, w_ih, w_hh, b_ih, b_hh):
        def cell(h, x_t):
            gx = x_t @ w_ih.T + b_ih
            gh = h @ w_hh.T + b_hh
            r = jax.nn.sigmoid(gx[:, :H] + gh[:, :H])
            z = jax.nn.sigmoid(gx[:, H:2 * H] + gh[:, H:2 * H])
            n = jnp.tanh(gx[:, 2 * H:] + r * gh[:, 2 * H:])
            h = (1.0 - z) * n + z * h
            return h, h
        h0 = jnp.zeros((B, H), jnp.float32)
        _, hs = lax.scan(cell, h0, jnp.swapaxes(x_dir, 0, 1))
        return hs                                                      # (T, B, H)

    hs_f = run(embed_seq, w_ih_f, w_hh_f, b_ih_f, b_hh_f)
    hs_b_rev = run(embed_seq[:, ::-1, :], w_ih_b, w_hh_b, b_ih_b, b_hh_b)
    hs_b = hs_b_rev[::-1]                                              # align to time t
    outputs = jnp.swapaxes(jnp.concatenate([hs_f, hs_b], axis=-1), 0, 1)  # (B, T, 2H)
    state = jnp.stack([hs_f[-1], hs_b_rev[-1]], axis=0)                # (2, B, H)
    return outputs, state


if __name__ == "__main__":
    B, T, I, H = 2, 8, 16, 32
    scale = 0.2

    key = jax.random.PRNGKey(0)
    ks = jax.random.split(key, 9)
    embed_seq = jax.random.normal(ks[0], (B, T, I), dtype=jnp.float32)
    w_ih_f = jax.random.normal(ks[1], (3 * H, I), dtype=jnp.float32) * scale
    w_hh_f = jax.random.normal(ks[2], (3 * H, H), dtype=jnp.float32) * scale
    b_ih_f = jax.random.normal(ks[3], (3 * H,), dtype=jnp.float32) * scale
    b_hh_f = jax.random.normal(ks[4], (3 * H,), dtype=jnp.float32) * scale
    w_ih_b = jax.random.normal(ks[5], (3 * H, I), dtype=jnp.float32) * scale
    w_hh_b = jax.random.normal(ks[6], (3 * H, H), dtype=jnp.float32) * scale
    b_ih_b = jax.random.normal(ks[7], (3 * H,), dtype=jnp.float32) * scale
    b_hh_b = jax.random.normal(ks[8], (3 * H,), dtype=jnp.float32) * scale

    outputs, state = bidir_encoder_forward(embed_seq,
                                           w_ih_f, w_hh_f, b_ih_f, b_hh_f,
                                           w_ih_b, w_hh_b, b_ih_b, b_hh_b)
    outputs = jax.block_until_ready(outputs)
    state = jax.block_until_ready(state)

    ref_out, ref_state = bidir_gru_reference(embed_seq,
                                             w_ih_f, w_hh_f, b_ih_f, b_hh_f,
                                             w_ih_b, w_hh_b, b_ih_b, b_hh_b)

    assert outputs.shape == (B, T, 2 * H)
    assert state.shape == (2, B, H)
    assert jnp.allclose(outputs, ref_out, atol=1e-5, rtol=1e-5), "outputs mismatch"
    assert jnp.allclose(state, ref_state, atol=1e-5, rtol=1e-5), "state mismatch"

    print("KERNEL_OK")
</pallas_src>

<mosaic_0001>
module attributes {stable_mosaic.version = 11 : i64} {
  func.func @bigru_kernel(%arg0: memref<16x16xf32, #tpu.memory_space<vmem>>, %arg1: memref<16x192xf32, #tpu.memory_space<vmem>>, %arg2: memref<1x192xf32, #tpu.memory_space<vmem>>, %arg3: memref<32x96xf32, #tpu.memory_space<vmem>>, %arg4: memref<1x96xf32, #tpu.memory_space<vmem>>, %arg5: memref<32x96xf32, #tpu.memory_space<vmem>>, %arg6: memref<1x96xf32, #tpu.memory_space<vmem>>, %arg7: memref<16x32xf32, #tpu.memory_space<vmem>>, %arg8: memref<16x32xf32, #tpu.memory_space<vmem>>, %arg9: memref<2x32xf32, #tpu.memory_space<vmem>>, %arg10: memref<2x32xf32, #tpu.memory_space<vmem>>, %arg11: memref<16x192xf32, #tpu.memory_space<vmem>>) attributes {dimension_semantics = [], scalar_prefetch = 0 : i64, scratch_operands = 1 : i64, tpu.core_type = #tpu.core_type<tc>} {
    %c0 = arith.constant 0 : index
    %c0_0 = arith.constant 0 : index
    %0 = vector.load %arg0[%c0, %c0_0] : memref<16x16xf32, #tpu.memory_space<vmem>>, vector<16x16xf32>
    %c0_1 = arith.constant 0 : index
    %c0_2 = arith.constant 0 : index
    %1 = vector.load %arg1[%c0_1, %c0_2] : memref<16x192xf32, #tpu.memory_space<vmem>>, vector<16x192xf32>
    %cst = arith.constant dense<0.000000e+00> : vector<16x192xf32>
    %2 = tpu.matmul %0, %1, %cst {dimension_numbers = #tpu.dot_dimension_numbers<[1], [0], [0], [1], [0, 0, 1, 1], [], []>} : vector<16x16xf32>, vector<16x192xf32>, vector<16x192xf32> -> vector<16x192xf32>
    %c0_3 = arith.constant 0 : index
    %c0_4 = arith.constant 0 : index
    %3 = vector.load %arg2[%c0_3, %c0_4] : memref<1x192xf32, #tpu.memory_space<vmem>>, vector<1x192xf32>
    %4 = vector.broadcast %3 : vector<1x192xf32> to vector<16x192xf32>
    %5 = arith.addf %2, %4 : vector<16x192xf32>
    %c0_5 = arith.constant 0 : index
    %c0_6 = arith.constant 0 : index
    %6 = vector.load %arg11[%c0_5, %c0_6] : memref<16x192xf32, #tpu.memory_space<vmem>>, vector<16x192xf32>
    tpu.vector_store %arg11[%c0_5, %c0_6], %5 {strides = array<i32>} : memref<16x192xf32, #tpu.memory_space<vmem>>, vector<16x192xf32>,
    %c0_7 = arith.constant 0 : index
    %c0_8 = arith.constant 0 : index
    %7 = vector.load %arg3[%c0_7, %c0_8] : memref<32x96xf32, #tpu.memory_space<vmem>>, vector<32x96xf32>
    %c0_9 = arith.constant 0 : index
    %c0_10 = arith.constant 0 : index
    %8 = vector.load %arg4[%c0_9, %c0_10] : memref<1x96xf32, #tpu.memory_space<vmem>>, vector<1x96xf32>
    %c0_11 = arith.constant 0 : index
    %c0_12 = arith.constant 0 : index
    %9 = vector.load %arg5[%c0_11, %c0_12] : memref<32x96xf32, #tpu.memory_space<vmem>>, vector<32x96xf32>
    %c0_13 = arith.constant 0 : index
    %c0_14 = arith.constant 0 : index
    %10 = vector.load %arg6[%c0_13, %c0_14] : memref<1x96xf32, #tpu.memory_space<vmem>>, vector<1x96xf32>
    %cst_15 = arith.constant 0.000000e+00 : f32
    %11 = vector.broadcast %cst_15 : f32 to vector<2x32xf32>
    %c0_i32 = arith.constant 0 : i32
    %c7_i32 = arith.constant 7 : i32
    %12 = arith.subi %c7_i32, %c0_i32 : i32
    %c2_i32 = arith.constant 2 : i32
    %13 = arith.muli %c0_i32, %c2_i32 : i32
    %14 = arith.index_cast %13 : i32 to index
    %c0_16 = arith.constant 0 : index
    %15 = vector.load %arg11[%14, %c0_16] : memref<16x192xf32, #tpu.memory_space<vmem>>, vector<2x96xf32>
    %c2_i32_17 = arith.constant 2 : i32
    %16 = arith.muli %12, %c2_i32_17 : i32
    %17 = arith.index_cast %16 : i32 to index
    %c96 = arith.constant 96 : index
    %18 = vector.load %arg11[%17, %c96] : memref<16x192xf32, #tpu.memory_space<vmem>>, vector<2x96xf32>
    %cst_18 = arith.constant dense<0.000000e+00> : vector<2x96xf32>
    %19 = tpu.matmul %11, %7, %cst_18 {dimension_numbers = #tpu.dot_dimension_numbers<[1], [0], [0], [1], [0, 0, 1, 1], [], []>} : vector<2x32xf32>, vector<32x96xf32>, vector<2x96xf32> -> vector<2x96xf32>
    %20 = vector.broadcast %8 : vector<1x96xf32> to vector<2x96xf32>
    %21 = arith.addf %19, %20 : vector<2x96xf32>
    %22 = vector.extract_strided_slice %15 {offsets = [0, 0], sizes = [2, 32], strides = [1, 1]} : vector<2x96xf32> to vector<2x32xf32>
    %23 = vector.extract_strided_slice %21 {offsets = [0, 0], sizes = [2, 32], strides = [1, 1]} : vector<2x96xf32> to vector<2x32xf32>
    %24 = arith.addf %22, %23 : vector<2x32xf32>
    %25 = arith.negf %24 : vector<2x32xf32>
    %26 = math.exp %25 : vector<2x32xf32>
    %cst_19 = arith.constant 1.000000e+00 : f32
    %27 = vector.broadcast %cst_19 : f32 to vector<2x32xf32>
    %28 = arith.addf %27, %26 : vector<2x32xf32>
    %29 = arith.divf %27, %28 : vector<2x32xf32>
    %30 = vector.extract_strided_slice %15 {offsets = [0, 32], sizes = [2, 32], strides = [1, 1]} : vector<2x96xf32> to vector<2x32xf32>
    %31 = vector.extract_strided_slice %21 {offsets = [0, 32], sizes = [2, 32], strides = [1, 1]} : vector<2x96xf32> to vector<2x32xf32>
    %32 = arith.addf %30, %31 : vector<2x32xf32>
    %33 = arith.negf %32 : vector<2x32xf32>
    %34 = math.exp %33 : vector<2x32xf32>
    %cst_20 = arith.constant 1.000000e+00 : f32
    %35 = vector.broadcast %cst_20 : f32 to vector<2x32xf32>
    %36 = arith.addf %35, %34 : vector<2x32xf32>
    %37 = arith.divf %35, %36 : vector<2x32xf32>
    %38 = vector.extract_strided_slice %15 {offsets = [0, 64], sizes = [2, 32], strides = [1, 1]} : vector<2x96xf32> to vector<2x32xf32>
    %39 = vector.extract_strided_slice %21 {offsets = [0, 64], sizes = [2, 32], strides = [1, 1]} : vector<2x96xf32> to vector<2x32xf32>
    %40 = arith.mulf %29, %39 : vector<2x32xf32>
    %41 = arith.addf %38, %40 : vector<2x32xf32>
    %42 = math.tanh %41 : vector<2x32xf32>
    %cst_21 = arith.constant 1.000000e+00 : f32
    %43 = vector.broadcast %cst_21 : f32 to vector<2x32xf32>
    %44 = arith.subf %43, %37 : vector<2x32xf32>
    %45 = arith.mulf %44, %42 : vector<2x32xf32>
    %46 = arith.mulf %37, %11 : vector<2x32xf32>
    %47 = arith.addf %45, %46 : vector<2x32xf32>
    %cst_22 = arith.constant dense<0.000000e+00> : vector<2x96xf32>
    %48 = tpu.matmul %11, %9, %cst_22 {dimension_numbers = #tpu.dot_dimension_numbers<[1], [0], [0], [1], [0, 0, 1, 1], [], []>} : vector<2x32xf32>, vector<32x96xf32>, vector<2x96xf32> -> vector<2x96xf32>
    %49 = vector.broadcast %10 : vector<1x96xf32> to vector<2x96xf32>
    %50 = arith.addf %48, %49 : vector<2x96xf32>
    %51 = vector.extract_strided_slice %18 {offsets = [0, 0], sizes = [2, 32], strides = [1, 1]} : vector<2x96xf32> to vector<2x32xf32>
    %52 = vector.extract_strided_slice %50 {offsets = [0, 0], sizes = [2, 32], strides = [1, 1]} : vector<2x96xf32> to vector<2x32xf32>
    %53 = arith.addf %51, %52 : vector<2x32xf32>
    %54 = arith.negf %53 : vector<2x32xf32>
    %55 = math.exp %54 : vector<2x32xf32>
    %cst_23 = arith.constant 1.000000e+00 : f32
    %56 = vector.broadcast %cst_23 : f32 to vector<2x32xf32>
    %57 = arith.addf %56, %55 : vector<2x32xf32>
    %58 = arith.divf %56, %57 : vector<2x32xf32>
    %59 = vector.extract_strided_slice %18 {offsets = [0, 32], sizes = [2, 32], strides = [1, 1]} : vector<2x96xf32> to vector<2x32xf32>
    %60 = vector.extract_strided_slice %50 {offsets = [0, 32], sizes = [2, 32], strides = [1, 1]} : vector<2x96xf32> to vector<2x32xf32>
    %61 = arith.addf %59, %60 : vector<2x32xf32>
    %62 = arith.negf %61 : vector<2x32xf32>
    %63 = math.exp %62 : vector<2x32xf32>
    %cst_24 = arith.constant 1.000000e+00 : f32
    %64 = vector.broadcast %cst_24 : f32 to vector<2x32xf32>
    %65 = arith.addf %64, %63 : vector<2x32xf32>
    %66 = arith.divf %64, %65 : vector<2x32xf32>
    %67 = vector.extract_strided_slice %18 {offsets = [0, 64], sizes = [2, 32], strides = [1, 1]} : vector<2x96xf32> to vector<2x32xf32>
    %68 = vector.extract_strided_slice %50 {offsets = [0, 64], sizes = [2, 32], strides = [1, 1]} : vector<2x96xf32> to vector<2x32xf32>
    %69 = arith.mulf %58, %68 : vector<2x32xf32>
    %70 = arith.addf %67, %69 : vector<2x32xf32>
    %71 = math.tanh %70 : vector<2x32xf32>
    %cst_25 = arith.constant 1.000000e+00 : f32
    %72 = vector.broadcast %cst_25 : f32 to vector<2x32xf32>
    %73 = arith.subf %72, %66 : vector<2x32xf32>
    %74 = arith.mulf %73, %71 : vector<2x32xf32>
    %75 = arith.mulf %66, %11 : vector<2x32xf32>
    %76 = arith.addf %74, %75 : vector<2x32xf32>
    %c2_i32_26 = arith.constant 2 : i32
    %77 = arith.muli %c0_i32, %c2_i32_26 : i32
    %78 = arith.index_cast %77 : i32 to index
    %c0_27 = arith.constant 0 : index
    %79 = vector.load %arg7[%78, %c0_27] : memref<16x32xf32, #tpu.memory_space<vmem>>, vector<2x32xf32>
    tpu.vector_store %arg7[%78, %c0_27], %47 {strides = array<i32>} : memref<16x32xf32, #tpu.memory_space<vmem>>, vector<2x32xf32>,
    %c2_i32_28 = arith.constant 2 : i32
    %80 = arith.muli %12, %c2_i32_28 : i32
    %81 = arith.index_cast %80 : i32 to index
    %c0_29 = arith.constant 0 : index
    %82 = vector.load %arg8[%81, %c0_29] : memref<16x32xf32, #tpu.memory_space<vmem>>, vector<2x32xf32>
    tpu.vector_store %arg8[%81, %c0_29], %76 {strides = array<i32>} : memref<16x32xf32, #tpu.memory_space<vmem>>, vector<2x32xf32>,
    %c1_i32 = arith.constant 1 : i32
    %c7_i32_30 = arith.constant 7 : i32
    %83 = arith.subi %c7_i32_30, %c1_i32 : i32
    %c2_i32_31 = arith.constant 2 : i32
    %84 = arith.muli %c1_i32, %c2_i32_31 : i32
    %85 = arith.index_cast %84 : i32 to index
    %c0_32 = arith.constant 0 : index
    %86 = vector.load %arg11[%85, %c0_32] : memref<16x192xf32, #tpu.memory_space<vmem>>, vector<2x96xf32>
    %c2_i32_33 = arith.constant 2 : i32
    %87 = arith.muli %83, %c2_i32_33 : i32
    %88 = arith.index_cast %87 : i32 to index
    %c96_34 = arith.constant 96 : index
    %89 = vector.load %arg11[%88, %c96_34] : memref<16x192xf32, #tpu.memory_space<vmem>>, vector<2x96xf32>
    %cst_35 = arith.constant dense<0.000000e+00> : vector<2x96xf32>
    %90 = tpu.matmul %47, %7, %cst_35 {dimension_numbers = #tpu.dot_dimension_numbers<[1], [0], [0], [1], [0, 0, 1, 1], [], []>} : vector<2x32xf32>, vector<32x96xf32>, vector<2x96xf32> -> vector<2x96xf32>
    %91 = vector.broadcast %8 : vector<1x96xf32> to vector<2x96xf32>
    %92 = arith.addf %90, %91 : vector<2x96xf32>
    %93 = vector.extract_strided_slice %86 {offsets = [0, 0], sizes = [2, 32], strides = [1, 1]} : vector<2x96xf32> to vector<2x32xf32>
    %94 = vector.extract_strided_slice %92 {offsets = [0, 0], sizes = [2, 32], strides = [1, 1]} : vector<2x96xf32> to vector<2x32xf32>
    %95 = arith.addf %93, %94 : vector<2x32xf32>
    %96 = arith.negf %95 : vector<2x32xf32>
    %97 = math.exp %96 : vector<2x32xf32>
    %cst_36 = arith.constant 1.000000e+00 : f32
    %98 = vector.broadcast %cst_36 : f32 to vector<2x32xf32>
    %99 = arith.addf %98, %97 : vector<2x32xf32>
    %100 = arith.divf %98, %99 : vector<2x32xf32>
    %101 = vector.extract_strided_slice %86 {offsets = [0, 32], sizes = [2, 32], strides = [1, 1]} : vector<2x96xf32> to vector<2x32xf32>
    %102 = vector.extract_strided_slice %92 {offsets = [0, 32], sizes = [2, 32], strides = [1, 1]} : vector<2x96xf32> to vector<2x32xf32>
    %103 = arith.addf %101, %102 : vector<2x32xf32>
    %104 = arith.negf %103 : vector<2x32xf32>
    %105 = math.exp %104 : vector<2x32xf32>
    %cst_37 = arith.constant 1.000000e+00 : f32
    %106 = vector.broadcast %cst_37 : f32 to vector<2x32xf32>
    %107 = arith.addf %106, %105 : vector<2x32xf32>
    %108 = arith.divf %106, %107 : vector<2x32xf32>
    %109 = vector.extract_strided_slice %86 {offsets = [0, 64], sizes = [2, 32], strides = [1, 1]} : vector<2x96xf32> to vector<2x32xf32>
    %110 = vector.extract_strided_slice %92 {offsets = [0, 64], sizes = [2, 32], strides = [1, 1]} : vector<2x96xf32> to vector<2x32xf32>
    %111 = arith.mulf %100, %110 : vector<2x32xf32>
    %112 = arith.addf %109, %111 : vector<2x32xf32>
    %113 = math.tanh %112 : vector<2x32xf32>
    %cst_38 = arith.constant 1.000000e+00 : f32
    %114 = vector.broadcast %cst_38 : f32 to vector<2x32xf32>
    %115 = arith.subf %114, %108 : vector<2x32xf32>
    %116 = arith.mulf %115, %113 : vector<2x32xf32>
    %117 = arith.mulf %108, %47 : vector<2x32xf32>
    %118 = arith.addf %116, %117 : vector<2x32xf32>
    %cst_39 = arith.constant dense<0.000000e+00> : vector<2x96xf32>
    %119 = tpu.matmul %76, %9, %cst_39 {dimension_numbers = #tpu.dot_dimension_numbers<[1], [0], [0], [1], [0, 0, 1, 1], [], []>} : vector<2x32xf32>, vector<32x96xf32>, vector<2x96xf32> -> vector<2x96xf32>
    %120 = vector.broadcast %10 : vector<1x96xf32> to vector<2x96xf32>
    %121 = arith.addf %119, %120 : vector<2x96xf32>
    %122 = vector.extract_strided_slice %89 {offsets = [0, 0], sizes = [2, 32], strides = [1, 1]} : vector<2x96xf32> to vector<2x32xf32>
    %123 = vector.extract_strided_slice %121 {offsets = [0, 0], sizes = [2, 32], strides = [1, 1]} : vector<2x96xf32> to vector<2x32xf32>
    %124 = arith.addf %122, %123 : vector<2x32xf32>
    %125 = arith.negf %124 : vector<2x32xf32>
    %126 = math.exp %125 : vector<2x32xf32>
    %cst_40 = arith.constant 1.000000e+00 : f32
    %127 = vector.broadcast %cst_40 : f32 to vector<2x32xf32>
    %128 = arith.addf %127, %126 : vector<2x32xf32>
    %129 = arith.divf %127, %128 : vector<2x32xf32>
    %130 = vector.extract_strided_slice %89 {offsets = [0, 32], sizes = [2, 32], strides = [1, 1]} : vector<2x96xf32> to vector<2x32xf32>
    %131 = vector.extract_strided_slice %121 {offsets = [0, 32], sizes = [2, 32], strides = [1, 1]} : vector<2x96xf32> to vector<2x32xf32>
    %132 = arith.addf %130, %131 : vector<2x32xf32>
    %133 = arith.negf %132 : vector<2x32xf32>
    %134 = math.exp %133 : vector<2x32xf32>
    %cst_41 = arith.constant 1.000000e+00 : f32
    %135 = vector.broadcast %cst_41 : f32 to vector<2x32xf32>
    %136 = arith.addf %135, %134 : vector<2x32xf32>
    %137 = arith.divf %135, %136 : vector<2x32xf32>
    %138 = vector.extract_strided_slice %89 {offsets = [0, 64], sizes = [2, 32], strides = [1, 1]} : vector<2x96xf32> to vector<2x32xf32>
    %139 = vector.extract_strided_slice %121 {offsets = [0, 64], sizes = [2, 32], strides = [1, 1]} : vector<2x96xf32> to vector<2x32xf32>
    %140 = arith.mulf %129, %139 : vector<2x32xf32>
    %141 = arith.addf %138, %140 : vector<2x32xf32>
    %142 = math.tanh %141 : vector<2x32xf32>
    %cst_42 = arith.constant 1.000000e+00 : f32
    %143 = vector.broadcast %cst_42 : f32 to vector<2x32xf32>
    %144 = arith.subf %143, %137 : vector<2x32xf32>
    %145 = arith.mulf %144, %142 : vector<2x32xf32>
    %146 = arith.mulf %137, %76 : vector<2x32xf32>
    %147 = arith.addf %145, %146 : vector<2x32xf32>
    %c2_i32_43 = arith.constant 2 : i32
    %148 = arith.muli %c1_i32, %c2_i32_43 : i32
    %149 = arith.index_cast %148 : i32 to index
    %c0_44 = arith.constant 0 : index
    %150 = vector.load %arg7[%149, %c0_44] : memref<16x32xf32, #tpu.memory_space<vmem>>, vector<2x32xf32>
    tpu.vector_store %arg7[%149, %c0_44], %118 {strides = array<i32>} : memref<16x32xf32, #tpu.memory_space<vmem>>, vector<2x32xf32>,
    %c2_i32_45 = arith.constant 2 : i32
    %151 = arith.muli %83, %c2_i32_45 : i32
    %152 = arith.index_cast %151 : i32 to index
    %c0_46 = arith.constant 0 : index
    %153 = vector.load %arg8[%152, %c0_46] : memref<16x32xf32, #tpu.memory_space<vmem>>, vector<2x32xf32>
    tpu.vector_store %arg8[%152, %c0_46], %147 {strides = array<i32>} : memref<16x32xf32, #tpu.memory_space<vmem>>, vector<2x32xf32>,
    %c2_i32_47 = arith.constant 2 : i32
    %c7_i32_48 = arith.constant 7 : i32
    %154 = arith.subi %c7_i32_48, %c2_i32_47 : i32
    %c2_i32_49 = arith.constant 2 : i32
    %155 = arith.muli %c2_i32_47, %c2_i32_49 : i32
    %156 = arith.index_cast %155 : i32 to index
    %c0_50 = arith.constant 0 : index
    %157 = vector.load %arg11[%156, %c0_50] : memref<16x192xf32, #tpu.memory_space<vmem>>, vector<2x96xf32>
    %c2_i32_51 = arith.constant 2 : i32
    %158 = arith.muli %154, %c2_i32_51 : i32
    %159 = arith.index_cast %158 : i32 to index
    %c96_52 = arith.constant 96 : index
    %160 = vector.load %arg11[%159, %c96_52] : memref<16x192xf32, #tpu.memory_space<vmem>>, vector<2x96xf32>
    %cst_53 = arith.constant dense<0.000000e+00> : vector<2x96xf32>
    %161 = tpu.matmul %118, %7, %cst_53 {dimension_numbers = #tpu.dot_dimension_numbers<[1], [0], [0], [1], [0, 0, 1, 1], [], []>} : vector<2x32xf32>, vector<32x96xf32>, vector<2x96xf32> -> vector<2x96xf32>
    %162 = vector.broadcast %8 : vector<1x96xf32> to vector<2x96xf32>
    %163 = arith.addf %161, %162 : vector<2x96xf32>
    %164 = vector.extract_strided_slice %157 {offsets = [0, 0], sizes = [2, 32], strides = [1, 1]} : vector<2x96xf32> to vector<2x32xf32>
    %165 = vector.extract_strided_slice %163 {offsets = [0, 0], sizes = [2, 32], strides = [1, 1]} : vector<2x96xf32> to vector<2x32xf32>
    %166 = arith.addf %164, %165 : vector<2x32xf32>
    %167 = arith.negf %166 : vector<2x32xf32>
    %168 = math.exp %167 : vector<2x32xf32>
    %cst_54 = arith.constant 1.000000e+00 : f32
    %169 = vector.broadcast %cst_54 : f32 to vector<2x32xf32>
    %170 = arith.addf %169, %168 : vector<2x32xf32>
    %171 = arith.divf %169, %170 : vector<2x32xf32>
    %172 = vector.extract_strided_slice %157 {offsets = [0, 32], sizes = [2, 32], strides = [1, 1]} : vector<2x96xf32> to vector<2x32xf32>
    %173 = vector.extract_strided_slice %163 {offsets = [0, 32], sizes = [2, 32], strides = [1, 1]} : vector<2x96xf32> to vector<2x32xf32>
    %174 = arith.addf %172, %173 : vector<2x32xf32>
    %175 = arith.negf %174 : vector<2x32xf32>
    %176 = math.exp %175 : vector<2x32xf32>
    %cst_55 = arith.constant 1.000000e+00 : f32
    %177 = vector.broadcast %cst_55 : f32 to vector<2x32xf32>
    %178 = arith.addf %177, %176 : vector<2x32xf32>
    %179 = arith.divf %177, %178 : vector<2x32xf32>
    %180 = vector.extract_strided_slice %157 {offsets = [0, 64], sizes = [2, 32], strides = [1, 1]} : vector<2x96xf32> to vector<2x32xf32>
    %181 = vector.extract_strided_slice %163 {offsets = [0, 64], sizes = [2, 32], strides = [1, 1]} : vector<2x96xf32> to vector<2x32xf32>
    %182 = arith.mulf %171, %181 : vector<2x32xf32>
    %183 = arith.addf %180, %182 : vector<2x32xf32>
    %184 = math.tanh %183 : vector<2x32xf32>
    %cst_56 = arith.constant 1.000000e+00 : f32
    %185 = vector.broadcast %cst_56 : f32 to vector<2x32xf32>
    %186 = arith.subf %185, %179 : vector<2x32xf32>
    %187 = arith.mulf %186, %184 : vector<2x32xf32>
    %188 = arith.mulf %179, %118 : vector<2x32xf32>
    %189 = arith.addf %187, %188 : vector<2x32xf32>
    %cst_57 = arith.constant dense<0.000000e+00> : vector<2x96xf32>
    %190 = tpu.matmul %147, %9, %cst_57 {dimension_numbers = #tpu.dot_dimension_numbers<[1], [0], [0], [1], [0, 0, 1, 1], [], []>} : vector<2x32xf32>, vector<32x96xf32>, vector<2x96xf32> -> vector<2x96xf32>
    %191 = vector.broadcast %10 : vector<1x96xf32> to vector<2x96xf32>
    %192 = arith.addf %190, %191 : vector<2x96xf32>
    %193 = vector.extract_strided_slice %160 {offsets = [0, 0], sizes = [2, 32], strides = [1, 1]} : vector<2x96xf32> to vector<2x32xf32>
    %194 = vector.extract_strided_slice %192 {offsets = [0, 0], sizes = [2, 32], strides = [1, 1]} : vector<2x96xf32> to vector<2x32xf32>
    %195 = arith.addf %193, %194 : vector<2x32xf32>
    %196 = arith.negf %195 : vector<2x32xf32>
    %197 = math.exp %196 : vector<2x32xf32>
    %cst_58 = arith.constant 1.000000e+00 : f32
    %198 = vector.broadcast %cst_58 : f32 to vector<2x32xf32>
    %199 = arith.addf %198, %197 : vector<2x32xf32>
    %200 = arith.divf %198, %199 : vector<2x32xf32>
    %201 = vector.extract_strided_slice %160 {offsets = [0, 32], sizes = [2, 32], strides = [1, 1]} : vector<2x96xf32> to vector<2x32xf32>
    %202 = vector.extract_strided_slice %192 {offsets = [0, 32], sizes = [2, 32], strides = [1, 1]} : vector<2x96xf32> to vector<2x32xf32>
    %203 = arith.addf %201, %202 : vector<2x32xf32>
    %204 = arith.negf %203 : vector<2x32xf32>
    %205 = math.exp %204 : vector<2x32xf32>
    %cst_59 = arith.constant 1.000000e+00 : f32
    %206 = vector.broadcast %cst_59 : f32 to vector<2x32xf32>
    %207 = arith.addf %206, %205 : vector<2x32xf32>
    %208 = arith.divf %206, %207 : vector<2x32xf32>
    %209 = vector.extract_strided_slice %160 {offsets = [0, 64], sizes = [2, 32], strides = [1, 1]} : vector<2x96xf32> to vector<2x32xf32>
    %210 = vector.extract_strided_slice %192 {offsets = [0, 64], sizes = [2, 32], strides = [1, 1]} : vector<2x96xf32> to vector<2x32xf32>
    %211 = arith.mulf %200, %210 : vector<2x32xf32>
    %212 = arith.addf %209, %211 : vector<2x32xf32>
    %213 = math.tanh %212 : vector<2x32xf32>
    %cst_60 = arith.constant 1.000000e+00 : f32
    %214 = vector.broadcast %cst_60 : f32 to vector<2x32xf32>
    %215 = arith.subf %214, %208 : vector<2x32xf32>
    %216 = arith.mulf %215, %213 : vector<2x32xf32>
    %217 = arith.mulf %208, %147 : vector<2x32xf32>
    %218 = arith.addf %216, %217 : vector<2x32xf32>
    %c2_i32_61 = arith.constant 2 : i32
    %219 = arith.muli %c2_i32_47, %c2_i32_61 : i32
    %220 = arith.index_cast %219 : i32 to index
    %c0_62 = arith.constant 0 : index
    %221 = vector.load %arg7[%220, %c0_62] : memref<16x32xf32, #tpu.memory_space<vmem>>, vector<2x32xf32>
    tpu.vector_store %arg7[%220, %c0_62], %189 {strides = array<i32>} : memref<16x32xf32, #tpu.memory_space<vmem>>, vector<2x32xf32>,
    %c2_i32_63 = arith.constant 2 : i32
    %222 = arith.muli %154, %c2_i32_63 : i32
    %223 = arith.index_cast %222 : i32 to index
    %c0_64 = arith.constant 0 : index
    %224 = vector.load %arg8[%223, %c0_64] : memref<16x32xf32, #tpu.memory_space<vmem>>, vector<2x32xf32>
    tpu.vector_store %arg8[%223, %c0_64], %218 {strides = array<i32>} : memref<16x32xf32, #tpu.memory_space<vmem>>, vector<2x32xf32>,
    %c3_i32 = arith.constant 3 : i32
    %c7_i32_65 = arith.constant 7 : i32
    %225 = arith.subi %c7_i32_65, %c3_i32 : i32
    %c2_i32_66 = arith.constant 2 : i32
    %226 = arith.muli %c3_i32, %c2_i32_66 : i32
    %227 = arith.index_cast %226 : i32 to index
    %c0_67 = arith.constant 0 : index
    %228 = vector.load %arg11[%227, %c0_67] : memref<16x192xf32, #tpu.memory_space<vmem>>, vector<2x96xf32>
    %c2_i32_68 = arith.constant 2 : i32
    %229 = arith.muli %225, %c2_i32_68 : i32
    %230 = arith.index_cast %229 : i32 to index
    %c96_69 = arith.constant 96 : index
    %231 = vector.load %arg11[%230, %c96_69] : memref<16x192xf32, #tpu.memory_space<vmem>>, vector<2x96xf32>
    %cst_70 = arith.constant dense<0.000000e+00> : vector<2x96xf32>
    %232 = tpu.matmul %189, %7, %cst_70 {dimension_numbers = #tpu.dot_dimension_numbers<[1], [0], [0], [1], [0, 0, 1, 1], [], []>} : vector<2x32xf32>, vector<32x96xf32>, vector<2x96xf32> -> vector<2x96xf32>
    %233 = vector.broadcast %8 : vector<1x96xf32> to vector<2x96xf32>
    %234 = arith.addf %232, %233 : vector<2x96xf32>
    %235 = vector.extract_strided_slice %228 {offsets = [0, 0], sizes = [2, 32], strides = [1, 1]} : vector<2x96xf32> to vector<2x32xf32>
    %236 = vector.extract_strided_slice %234 {offsets = [0, 0], sizes = [2, 32], strides = [1, 1]} : vector<2x96xf32> to vector<2x32xf32>
    %237 = arith.addf %235, %236 : vector<2x32xf32>
    %238 = arith.negf %237 : vector<2x32xf32>
    %239 = math.exp %238 : vector<2x32xf32>
    %cst_71 = arith.constant 1.000000e+00 : f32
    %240 = vector.broadcast %cst_71 : f32 to vector<2x32xf32>
    %241 = arith.addf %240, %239 : vector<2x32xf32>
    %242 = arith.divf %240, %241 : vector<2x32xf32>
    %243 = vector.extract_strided_slice %228 {offsets = [0, 32], sizes = [2, 32], strides = [1, 1]} : vector<2x96xf32> to vector<2x32xf32>
    %244 = vector.extract_strided_slice %234 {offsets = [0, 32], sizes = [2, 32], strides = [1, 1]} : vector<2x96xf32> to vector<2x32xf32>
    %245 = arith.addf %243, %244 : vector<2x32xf32>
    %246 = arith.negf %245 : vector<2x32xf32>
    %247 = math.exp %246 : vector<2x32xf32>
    %cst_72 = arith.constant 1.000000e+00 : f32
    %248 = vector.broadcast %cst_72 : f32 to vector<2x32xf32>
    %249 = arith.addf %248, %247 : vector<2x32xf32>
    %250 = arith.divf %248, %249 : vector<2x32xf32>
    %251 = vector.extract_strided_slice %228 {offsets = [0, 64], sizes = [2, 32], strides = [1, 1]} : vector<2x96xf32> to vector<2x32xf32>
    %252 = vector.extract_strided_slice %234 {offsets = [0, 64], sizes = [2, 32], strides = [1, 1]} : vector<2x96xf32> to vector<2x32xf32>
    %253 = arith.mulf %242, %252 : vector<2x32xf32>
    %254 = arith.addf %251, %253 : vector<2x32xf32>
    %255 = math.tanh %254 : vector<2x32xf32>
    %cst_73 = arith.constant 1.000000e+00 : f32
    %256 = vector.broadcast %cst_73 : f32 to vector<2x32xf32>
    %257 = arith.subf %256, %250 : vector<2x32xf32>
    %258 = arith.mulf %257, %255 : vector<2x32xf32>
    %259 = arith.mulf %250, %189 : vector<2x32xf32>
    %260 = arith.addf %258, %259 : vector<2x32xf32>
    %cst_74 = arith.constant dense<0.000000e+00> : vector<2x96xf32>
    %261 = tpu.matmul %218, %9, %cst_74 {dimension_numbers = #tpu.dot_dimension_numbers<[1], [0], [0], [1], [0, 0, 1, 1], [], []>} : vector<2x32xf32>, vector<32x96xf32>, vector<2x96xf32> -> vector<2x96xf32>
    %262 = vector.broadcast %10 : vector<1x96xf32> to vector<2x96xf32>
    %263 = arith.addf %261, %262 : vector<2x96xf32>
    %264 = vector.extract_strided_slice %231 {offsets = [0, 0], sizes = [2, 32], strides = [1, 1]} : vector<2x96xf32> to vector<2x32xf32>
    %265 = vector.extract_strided_slice %263 {offsets = [0, 0], sizes = [2, 32], strides = [1, 1]} : vector<2x96xf32> to vector<2x32xf32>
    %266 = arith.addf %264, %265 : vector<2x32xf32>
    %267 = arith.negf %266 : vector<2x32xf32>
    %268 = math.exp %267 : vector<2x32xf32>
    %cst_75 = arith.constant 1.000000e+00 : f32
    %269 = vector.broadcast %cst_75 : f32 to vector<2x32xf32>
    %270 = arith.addf %269, %268 : vector<2x32xf32>
    %271 = arith.divf %269, %270 : vector<2x32xf32>
    %272 = vector.extract_strided_slice %231 {offsets = [0, 32], sizes = [2, 32], strides = [1, 1]} : vector<2x96xf32> to vector<2x32xf32>
    %273 = vector.extract_strided_slice %263 {offsets = [0, 32], sizes = [2, 32], strides = [1, 1]} : vector<2x96xf32> to vector<2x32xf32>
    %274 = arith.addf %272, %273 : vector<2x32xf32>
    %275 = arith.negf %274 : vector<2x32xf32>
    %276 = math.exp %275 : vector<2x32xf32>
    %cst_76 = arith.constant 1.000000e+00 : f32
    %277 = vector.broadcast %cst_76 : f32 to vector<2x32xf32>
    %278 = arith.addf %277, %276 : vector<2x32xf32>
    %279 = arith.divf %277, %278 : vector<2x32xf32>
    %280 = vector.extract_strided_slice %231 {offsets = [0, 64], sizes = [2, 32], strides = [1, 1]} : vector<2x96xf32> to vector<2x32xf32>
    %281 = vector.extract_strided_slice %263 {offsets = [0, 64], sizes = [2, 32], strides = [1, 1]} : vector<2x96xf32> to vector<2x32xf32>
    %282 = arith.mulf %271, %281 : vector<2x32xf32>
    %283 = arith.addf %280, %282 : vector<2x32xf32>
    %284 = math.tanh %283 : vector<2x32xf32>
    %cst_77 = arith.constant 1.000000e+00 : f32
    %285 = vector.broadcast %cst_77 : f32 to vector<2x32xf32>
    %286 = arith.subf %285, %279 : vector<2x32xf32>
    %287 = arith.mulf %286, %284 : vector<2x32xf32>
    %288 = arith.mulf %279, %218 : vector<2x32xf32>
    %289 = arith.addf %287, %288 : vector<2x32xf32>
    %c2_i32_78 = arith.constant 2 : i32
    %290 = arith.muli %c3_i32, %c2_i32_78 : i32
    %291 = arith.index_cast %290 : i32 to index
    %c0_79 = arith.constant 0 : index
    %292 = vector.load %arg7[%291, %c0_79] : memref<16x32xf32, #tpu.memory_space<vmem>>, vector<2x32xf32>
    tpu.vector_store %arg7[%291, %c0_79], %260 {strides = array<i32>} : memref<16x32xf32, #tpu.memory_space<vmem>>, vector<2x32xf32>,
    %c2_i32_80 = arith.constant 2 : i32
    %293 = arith.muli %225, %c2_i32_80 : i32
    %294 = arith.index_cast %293 : i32 to index
    %c0_81 = arith.constant 0 : index
    %295 = vector.load %arg8[%294, %c0_81] : memref<16x32xf32, #tpu.memory_space<vmem>>, vector<2x32xf32>
    tpu.vector_store %arg8[%294, %c0_81], %289 {strides = array<i32>} : memref<16x32xf32, #tpu.memory_space<vmem>>, vector<2x32xf32>,
    %c4_i32 = arith.constant 4 : i32
    %c7_i32_82 = arith.constant 7 : i32
    %296 = arith.subi %c7_i32_82, %c4_i32 : i32
    %c2_i32_83 = arith.constant 2 : i32
    %297 = arith.muli %c4_i32, %c2_i32_83 : i32
    %298 = arith.index_cast %297 : i32 to index
    %c0_84 = arith.constant 0 : index
    %299 = vector.load %arg11[%298, %c0_84] : memref<16x192xf32, #tpu.memory_space<vmem>>, vector<2x96xf32>
    %c2_i32_85 = arith.constant 2 : i32
    %300 = arith.muli %296, %c2_i32_85 : i32
    %301 = arith.index_cast %300 : i32 to index
    %c96_86 = arith.constant 96 : index
    %302 = vector.load %arg11[%301, %c96_86] : memref<16x192xf32, #tpu.memory_space<vmem>>, vector<2x96xf32>
    %cst_87 = arith.constant dense<0.000000e+00> : vector<2x96xf32>
    %303 = tpu.matmul %260, %7, %cst_87 {dimension_numbers = #tpu.dot_dimension_numbers<[1], [0], [0], [1], [0, 0, 1, 1], [], []>} : vector<2x32xf32>, vector<32x96xf32>, vector<2x96xf32> -> vector<2x96xf32>
    %304 = vector.broadcast %8 : vector<1x96xf32> to vector<2x96xf32>
    %305 = arith.addf %303, %304 : vector<2x96xf32>
    %306 = vector.extract_strided_slice %299 {offsets = [0, 0], sizes = [2, 32], strides = [1, 1]} : vector<2x96xf32> to vector<2x32xf32>
    %307 = vector.extract_strided_slice %305 {offsets = [0, 0], sizes = [2, 32], strides = [1, 1]} : vector<2x96xf32> to vector<2x32xf32>
    %308 = arith.addf %306, %307 : vector<2x32xf32>
    %309 = arith.negf %308 : vector<2x32xf32>
    %310 = math.exp %309 : vector<2x32xf32>
    %cst_88 = arith.constant 1.000000e+00 : f32
    %311 = vector.broadcast %cst_88 : f32 to vector<2x32xf32>
    %312 = arith.addf %311, %310 : vector<2x32xf32>
    %313 = arith.divf %311, %312 : vector<2x32xf32>
    %314 = vector.extract_strided_slice %299 {offsets = [0, 32], sizes = [2, 32], strides = [1, 1]} : vector<2x96xf32> to vector<2x32xf32>
    %315 = vector.extract_strided_slice %305 {offsets = [0, 32], sizes = [2, 32], strides = [1, 1]} : vector<2x96xf32> to vector<2x32xf32>
    %316 = arith.addf %314, %315 : vector<2x32xf32>
    %317 = arith.negf %316 : vector<2x32xf32>
    %318 = math.exp %317 : vector<2x32xf32>
    %cst_89 = arith.constant 1.000000e+00 : f32
    %319 = vector.broadcast %cst_89 : f32 to vector<2x32xf32>
    %320 = arith.addf %319, %318 : vector<2x32xf32>
    %321 = arith.divf %319, %320 : vector<2x32xf32>
    %322 = vector.extract_strided_slice %299 {offsets = [0, 64], sizes = [2, 32], strides = [1, 1]} : vector<2x96xf32> to vector<2x32xf32>
    %323 = vector.extract_strided_slice %305 {offsets = [0, 64], sizes = [2, 32], strides = [1, 1]} : vector<2x96xf32> to vector<2x32xf32>
    %324 = arith.mulf %313, %323 : vector<2x32xf32>
    %325 = arith.addf %322, %324 : vector<2x32xf32>
    %326 = math.tanh %325 : vector<2x32xf32>
    %cst_90 = arith.constant 1.000000e+00 : f32
    %327 = vector.broadcast %cst_90 : f32 to vector<2x32xf32>
    %328 = arith.subf %327, %321 : vector<2x32xf32>
    %329 = arith.mulf %328, %326 : vector<2x32xf32>
    %330 = arith.mulf %321, %260 : vector<2x32xf32>
    %331 = arith.addf %329, %330 : vector<2x32xf32>
    %cst_91 = arith.constant dense<0.000000e+00> : vector<2x96xf32>
    %332 = tpu.matmul %289, %9, %cst_91 {dimension_numbers = #tpu.dot_dimension_numbers<[1], [0], [0], [1], [0, 0, 1, 1], [], []>} : vector<2x32xf32>, vector<32x96xf32>, vector<2x96xf32> -> vector<2x96xf32>
    %333 = vector.broadcast %10 : vector<1x96xf32> to vector<2x96xf32>
    %334 = arith.addf %332, %333 : vector<2x96xf32>
    %335 = vector.extract_strided_slice %302 {offsets = [0, 0], sizes = [2, 32], strides = [1, 1]} : vector<2x96xf32> to vector<2x32xf32>
    %336 = vector.extract_strided_slice %334 {offsets = [0, 0], sizes = [2, 32], strides = [1, 1]} : vector<2x96xf32> to vector<2x32xf32>
    %337 = arith.addf %335, %336 : vector<2x32xf32>
    %338 = arith.negf %337 : vector<2x32xf32>
    %339 = math.exp %338 : vector<2x32xf32>
    %cst_92 = arith.constant 1.000000e+00 : f32
    %340 = vector.broadcast %cst_92 : f32 to vector<2x32xf32>
    %341 = arith.addf %340, %339 : vector<2x32xf32>
    %342 = arith.divf %340, %341 : vector<2x32xf32>
    %343 = vector.extract_strided_slice %302 {offsets = [0, 32], sizes = [2, 32], strides = [1, 1]} : vector<2x96xf32> to vector<2x32xf32>
    %344 = vector.extract_strided_slice %334 {offsets = [0, 32], sizes = [2, 32], strides = [1, 1]} : vector<2x96xf32> to vector<2x32xf32>
    %345 = arith.addf %343, %344 : vector<2x32xf32>
    %346 = arith.negf %345 : vector<2x32xf32>
    %347 = math.exp %346 : vector<2x32xf32>
    %cst_93 = arith.constant 1.000000e+00 : f32
    %348 = vector.broadcast %cst_93 : f32 to vector<2x32xf32>
    %349 = arith.addf %348, %347 : vector<2x32xf32>
    %350 = arith.divf %348, %349 : vector<2x32xf32>
    %351 = vector.extract_strided_slice %302 {offsets = [0, 64], sizes = [2, 32], strides = [1, 1]} : vector<2x96xf32> to vector<2x32xf32>
    %352 = vector.extract_strided_slice %334 {offsets = [0, 64], sizes = [2, 32], strides = [1, 1]} : vector<2x96xf32> to vector<2x32xf32>
    %353 = arith.mulf %342, %352 : vector<2x32xf32>
    %354 = arith.addf %351, %353 : vector<2x32xf32>
    %355 = math.tanh %354 : vector<2x32xf32>
    %cst_94 = arith.constant 1.000000e+00 : f32
    %356 = vector.broadcast %cst_94 : f32 to vector<2x32xf32>
    %357 = arith.subf %356, %350 : vector<2x32xf32>
    %358 = arith.mulf %357, %355 : vector<2x32xf32>
    %359 = arith.mulf %350, %289 : vector<2x32xf32>
    %360 = arith.addf %358, %359 : vector<2x32xf32>
    %c2_i32_95 = arith.constant 2 : i32
    %361 = arith.muli %c4_i32, %c2_i32_95 : i32
    %362 = arith.index_cast %361 : i32 to index
    %c0_96 = arith.constant 0 : index
    %363 = vector.load %arg7[%362, %c0_96] : memref<16x32xf32, #tpu.memory_space<vmem>>, vector<2x32xf32>
    tpu.vector_store %arg7[%362, %c0_96], %331 {strides = array<i32>} : memref<16x32xf32, #tpu.memory_space<vmem>>, vector<2x32xf32>,
    %c2_i32_97 = arith.constant 2 : i32
    %364 = arith.muli %296, %c2_i32_97 : i32
    %365 = arith.index_cast %364 : i32 to index
    %c0_98 = arith.constant 0 : index
    %366 = vector.load %arg8[%365, %c0_98] : memref<16x32xf32, #tpu.memory_space<vmem>>, vector<2x32xf32>
    tpu.vector_store %arg8[%365, %c0_98], %360 {strides = array<i32>} : memref<16x32xf32, #tpu.memory_space<vmem>>, vector<2x32xf32>,
    %c5_i32 = arith.constant 5 : i32
    %c7_i32_99 = arith.constant 7 : i32
    %367 = arith.subi %c7_i32_99, %c5_i32 : i32
    %c2_i32_100 = arith.constant 2 : i32
    %368 = arith.muli %c5_i32, %c2_i32_100 : i32
    %369 = arith.index_cast %368 : i32 to index
    %c0_101 = arith.constant 0 : index
    %370 = vector.load %arg11[%369, %c0_101] : memref<16x192xf32, #tpu.memory_space<vmem>>, vector<2x96xf32>
    %c2_i32_102 = arith.constant 2 : i32
    %371 = arith.muli %367, %c2_i32_102 : i32
    %372 = arith.index_cast %371 : i32 to index
    %c96_103 = arith.constant 96 : index
    %373 = vector.load %arg11[%372, %c96_103] : memref<16x192xf32, #tpu.memory_space<vmem>>, vector<2x96xf32>
    %cst_104 = arith.constant dense<0.000000e+00> : vector<2x96xf32>
    %374 = tpu.matmul %331, %7, %cst_104 {dimension_numbers = #tpu.dot_dimension_numbers<[1], [0], [0], [1], [0, 0, 1, 1], [], []>} : vector<2x32xf32>, vector<32x96xf32>, vector<2x96xf32> -> vector<2x96xf32>
    %375 = vector.broadcast %8 : vector<1x96xf32> to vector<2x96xf32>
    %376 = arith.addf %374, %375 : vector<2x96xf32>
    %377 = vector.extract_strided_slice %370 {offsets = [0, 0], sizes = [2, 32], strides = [1, 1]} : vector<2x96xf32> to vector<2x32xf32>
    %378 = vector.extract_strided_slice %376 {offsets = [0, 0], sizes = [2, 32], strides = [1, 1]} : vector<2x96xf32> to vector<2x32xf32>
    %379 = arith.addf %377, %378 : vector<2x32xf32>
    %380 = arith.negf %379 : vector<2x32xf32>
    %381 = math.exp %380 : vector<2x32xf32>
    %cst_105 = arith.constant 1.000000e+00 : f32
    %382 = vector.broadcast %cst_105 : f32 to vector<2x32xf32>
    %383 = arith.addf %382, %381 : vector<2x32xf32>
    %384 = arith.divf %382, %383 : vector<2x32xf32>
    %385 = vector.extract_strided_slice %370 {offsets = [0, 32], sizes = [2, 32], strides = [1, 1]} : vector<2x96xf32> to vector<2x32xf32>
    %386 = vector.extract_strided_slice %376 {offsets = [0, 32], sizes = [2, 32], strides = [1, 1]} : vector<2x96xf32> to vector<2x32xf32>
    %387 = arith.addf %385, %386 : vector<2x32xf32>
    %388 = arith.negf %387 : vector<2x32xf32>
    %389 = math.exp %388 : vector<2x32xf32>
    %cst_106 = arith.constant 1.000000e+00 : f32
    %390 = vector.broadcast %cst_106 : f32 to vector<2x32xf32>
    %391 = arith.addf %390, %389 : vector<2x32xf32>
    %392 = arith.divf %390, %391 : vector<2x32xf32>
    %393 = vector.extract_strided_slice %370 {offsets = [0, 64], sizes = [2, 32], strides = [1, 1]} : vector<2x96xf32> to vector<2x32xf32>
    %394 = vector.extract_strided_slice %376 {offsets = [0, 64], sizes = [2, 32], strides = [1, 1]} : vector<2x96xf32> to vector<2x32xf32>
    %395 = arith.mulf %384, %394 : vector<2x32xf32>
    %396 = arith.addf %393, %395 : vector<2x32xf32>
    %397 = math.tanh %396 : vector<2x32xf32>
    %cst_107 = arith.constant 1.000000e+00 : f32
    %398 = vector.broadcast %cst_107 : f32 to vector<2x32xf32>
    %399 = arith.subf %398, %392 : vector<2x32xf32>
    %400 = arith.mulf %399, %397 : vector<2x32xf32>
    %401 = arith.mulf %392, %331 : vector<2x32xf32>
    %402 = arith.addf %400, %401 : vector<2x32xf32>
    %cst_108 = arith.constant dense<0.000000e+00> : vector<2x96xf32>
    %403 = tpu.matmul %360, %9, %cst_108 {dimension_numbers = #tpu.dot_dimension_numbers<[1], [0], [0], [1], [0, 0, 1, 1], [], []>} : vector<2x32xf32>, vector<32x96xf32>, vector<2x96xf32> -> vector<2x96xf32>
    %404 = vector.broadcast %10 : vector<1x96xf32> to vector<2x96xf32>
    %405 = arith.addf %403, %404 : vector<2x96xf32>
    %406 = vector.extract_strided_slice %373 {offsets = [0, 0], sizes = [2, 32], strides = [1, 1]} : vector<2x96xf32> to vector<2x32xf32>
    %407 = vector.extract_strided_slice %405 {offsets = [0, 0], sizes = [2, 32], strides = [1, 1]} : vector<2x96xf32> to vector<2x32xf32>
    %408 = arith.addf %406, %407 : vector<2x32xf32>
    %409 = arith.negf %408 : vector<2x32xf32>
    %410 = math.exp %409 : vector<2x32xf32>
    %cst_109 = arith.constant 1.000000e+00 : f32
    %411 = vector.broadcast %cst_109 : f32 to vector<2x32xf32>
    %412 = arith.addf %411, %410 : vector<2x32xf32>
    %413 = arith.divf %411, %412 : vector<2x32xf32>
    %414 = vector.extract_strided_slice %373 {offsets = [0, 32], sizes = [2, 32], strides = [1, 1]} : vector<2x96xf32> to vector<2x32xf32>
    %415 = vector.extract_strided_slice %405 {offsets = [0, 32], sizes = [2, 32], strides = [1, 1]} : vector<2x96xf32> to vector<2x32xf32>
    %416 = arith.addf %414, %415 : vector<2x32xf32>
    %417 = arith.negf %416 : vector<2x32xf32>
    %418 = math.exp %417 : vector<2x32xf32>
    %cst_110 = arith.constant 1.000000e+00 : f32
    %419 = vector.broadcast %cst_110 : f32 to vector<2x32xf32>
    %420 = arith.addf %419, %418 : vector<2x32xf32>
    %421 = arith.divf %419, %420 : vector<2x32xf32>
    %422 = vector.extract_strided_slice %373 {offsets = [0, 64], sizes = [2, 32], strides = [1, 1]} : vector<2x96xf32> to vector<2x32xf32>
    %423 = vector.extract_strided_slice %405 {offsets = [0, 64], sizes = [2, 32], strides = [1, 1]} : vector<2x96xf32> to vector<2x32xf32>
    %424 = arith.mulf %413, %423 : vector<2x32xf32>
    %425 = arith.addf %422, %424 : vector<2x32xf32>
    %426 = math.tanh %425 : vector<2x32xf32>
    %cst_111 = arith.constant 1.000000e+00 : f32
    %427 = vector.broadcast %cst_111 : f32 to vector<2x32xf32>
    %428 = arith.subf %427, %421 : vector<2x32xf32>
    %429 = arith.mulf %428, %426 : vector<2x32xf32>
    %430 = arith.mulf %421, %360 : vector<2x32xf32>
    %431 = arith.addf %429, %430 : vector<2x32xf32>
    %c2_i32_112 = arith.constant 2 : i32
    %432 = arith.muli %c5_i32, %c2_i32_112 : i32
    %433 = arith.index_cast %432 : i32 to index
    %c0_113 = arith.constant 0 : index
    %434 = vector.load %arg7[%433, %c0_113] : memref<16x32xf32, #tpu.memory_space<vmem>>, vector<2x32xf32>
    tpu.vector_store %arg7[%433, %c0_113], %402 {strides = array<i32>} : memref<16x32xf32, #tpu.memory_space<vmem>>, vector<2x32xf32>,
    %c2_i32_114 = arith.constant 2 : i32
    %435 = arith.muli %367, %c2_i32_114 : i32
    %436 = arith.index_cast %435 : i32 to index
    %c0_115 = arith.constant 0 : index
    %437 = vector.load %arg8[%436, %c0_115] : memref<16x32xf32, #tpu.memory_space<vmem>>, vector<2x32xf32>
    tpu.vector_store %arg8[%436, %c0_115], %431 {strides = array<i32>} : memref<16x32xf32, #tpu.memory_space<vmem>>, vector<2x32xf32>,
    %c6_i32 = arith.constant 6 : i32
    %c7_i32_116 = arith.constant 7 : i32
    %438 = arith.subi %c7_i32_116, %c6_i32 : i32
    %c2_i32_117 = arith.constant 2 : i32
    %439 = arith.muli %c6_i32, %c2_i32_117 : i32
    %440 = arith.index_cast %439 : i32 to index
    %c0_118 = arith.constant 0 : index
    %441 = vector.load %arg11[%440, %c0_118] : memref<16x192xf32, #tpu.memory_space<vmem>>, vector<2x96xf32>
    %c2_i32_119 = arith.constant 2 : i32
    %442 = arith.muli %438, %c2_i32_119 : i32
    %443 = arith.index_cast %442 : i32 to index
    %c96_120 = arith.constant 96 : index
    %444 = vector.load %arg11[%443, %c96_120] : memref<16x192xf32, #tpu.memory_space<vmem>>, vector<2x96xf32>
    %cst_121 = arith.constant dense<0.000000e+00> : vector<2x96xf32>
    %445 = tpu.matmul %402, %7, %cst_121 {dimension_numbers = #tpu.dot_dimension_numbers<[1], [0], [0], [1], [0, 0, 1, 1], [], []>} : vector<2x32xf32>, vector<32x96xf32>, vector<2x96xf32> -> vector<2x96xf32>
    %446 = vector.broadcast %8 : vector<1x96xf32> to vector<2x96xf32>
    %447 = arith.addf %445, %446 : vector<2x96xf32>
    %448 = vector.extract_strided_slice %441 {offsets = [0, 0], sizes = [2, 32], strides = [1, 1]} : vector<2x96xf32> to vector<2x32xf32>
    %449 = vector.extract_strided_slice %447 {offsets = [0, 0], sizes = [2, 32], strides = [1, 1]} : vector<2x96xf32> to vector<2x32xf32>
    %450 = arith.addf %448, %449 : vector<2x32xf32>
    %451 = arith.negf %450 : vector<2x32xf32>
    %452 = math.exp %451 : vector<2x32xf32>
    %cst_122 = arith.constant 1.000000e+00 : f32
    %453 = vector.broadcast %cst_122 : f32 to vector<2x32xf32>
    %454 = arith.addf %453, %452 : vector<2x32xf32>
    %455 = arith.divf %453, %454 : vector<2x32xf32>
    %456 = vector.extract_strided_slice %441 {offsets = [0, 32], sizes = [2, 32], strides = [1, 1]} : vector<2x96xf32> to vector<2x32xf32>
    %457 = vector.extract_strided_slice %447 {offsets = [0, 32], sizes = [2, 32], strides = [1, 1]} : vector<2x96xf32> to vector<2x32xf32>
    %458 = arith.addf %456, %457 : vector<2x32xf32>
    %459 = arith.negf %458 : vector<2x32xf32>
    %460 = math.exp %459 : vector<2x32xf32>
    %cst_123 = arith.constant 1.000000e+00 : f32
    %461 = vector.broadcast %cst_123 : f32 to vector<2x32xf32>
    %462 = arith.addf %461, %460 : vector<2x32xf32>
    %463 = arith.divf %461, %462 : vector<2x32xf32>
    %464 = vector.extract_strided_slice %441 {offsets = [0, 64], sizes = [2, 32], strides = [1, 1]} : vector<2x96xf32> to vector<2x32xf32>
    %465 = vector.extract_strided_slice %447 {offsets = [0, 64], sizes = [2, 32], strides = [1, 1]} : vector<2x96xf32> to vector<2x32xf32>
    %466 = arith.mulf %455, %465 : vector<2x32xf32>
    %467 = arith.addf %464, %466 : vector<2x32xf32>
    %468 = math.tanh %467 : vector<2x32xf32>
    %cst_124 = arith.constant 1.000000e+00 : f32
    %469 = vector.broadcast %cst_124 : f32 to vector<2x32xf32>
    %470 = arith.subf %469, %463 : vector<2x32xf32>
    %471 = arith.mulf %470, %468 : vector<2x32xf32>
    %472 = arith.mulf %463, %402 : vector<2x32xf32>
    %473 = arith.addf %471, %472 : vector<2x32xf32>
    %cst_125 = arith.constant dense<0.000000e+00> : vector<2x96xf32>
    %474 = tpu.matmul %431, %9, %cst_125 {dimension_numbers = #tpu.dot_dimension_numbers<[1], [0], [0], [1], [0, 0, 1, 1], [], []>} : vector<2x32xf32>, vector<32x96xf32>, vector<2x96xf32> -> vector<2x96xf32>
    %475 = vector.broadcast %10 : vector<1x96xf32> to vector<2x96xf32>
    %476 = arith.addf %474, %475 : vector<2x96xf32>
    %477 = vector.extract_strided_slice %444 {offsets = [0, 0], sizes = [2, 32], strides = [1, 1]} : vector<2x96xf32> to vector<2x32xf32>
    %478 = vector.extract_strided_slice %476 {offsets = [0, 0], sizes = [2, 32], strides = [1, 1]} : vector<2x96xf32> to vector<2x32xf32>
    %479 = arith.addf %477, %478 : vector<2x32xf32>
    %480 = arith.negf %479 : vector<2x32xf32>
    %481 = math.exp %480 : vector<2x32xf32>
    %cst_126 = arith.constant 1.000000e+00 : f32
    %482 = vector.broadcast %cst_126 : f32 to vector<2x32xf32>
    %483 = arith.addf %482, %481 : vector<2x32xf32>
    %484 = arith.divf %482, %483 : vector<2x32xf32>
    %485 = vector.extract_strided_slice %444 {offsets = [0, 32], sizes = [2, 32], strides = [1, 1]} : vector<2x96xf32> to vector<2x32xf32>
    %486 = vector.extract_strided_slice %476 {offsets = [0, 32], sizes = [2, 32], strides = [1, 1]} : vector<2x96xf32> to vector<2x32xf32>
    %487 = arith.addf %485, %486 : vector<2x32xf32>
    %488 = arith.negf %487 : vector<2x32xf32>
    %489 = math.exp %488 : vector<2x32xf32>
    %cst_127 = arith.constant 1.000000e+00 : f32
    %490 = vector.broadcast %cst_127 : f32 to vector<2x32xf32>
    %491 = arith.addf %490, %489 : vector<2x32xf32>
    %492 = arith.divf %490, %491 : vector<2x32xf32>
    %493 = vector.extract_strided_slice %444 {offsets = [0, 64], sizes = [2, 32], strides = [1, 1]} : vector<2x96xf32> to vector<2x32xf32>
    %494 = vector.extract_strided_slice %476 {offsets = [0, 64], sizes = [2, 32], strides = [1, 1]} : vector<2x96xf32> to vector<2x32xf32>
    %495 = arith.mulf %484, %494 : vector<2x32xf32>
    %496 = arith.addf %493, %495 : vector<2x32xf32>
    %497 = math.tanh %496 : vector<2x32xf32>
    %cst_128 = arith.constant 1.000000e+00 : f32
    %498 = vector.broadcast %cst_128 : f32 to vector<2x32xf32>
    %499 = arith.subf %498, %492 : vector<2x32xf32>
    %500 = arith.mulf %499, %497 : vector<2x32xf32>
    %501 = arith.mulf %492, %431 : vector<2x32xf32>
    %502 = arith.addf %500, %501 : vector<2x32xf32>
    %c2_i32_129 = arith.constant 2 : i32
    %503 = arith.muli %c6_i32, %c2_i32_129 : i32
    %504 = arith.index_cast %503 : i32 to index
    %c0_130 = arith.constant 0 : index
    %505 = vector.load %arg7[%504, %c0_130] : memref<16x32xf32, #tpu.memory_space<vmem>>, vector<2x32xf32>
    tpu.vector_store %arg7[%504, %c0_130], %473 {strides = array<i32>} : memref<16x32xf32, #tpu.memory_space<vmem>>, vector<2x32xf32>,
    %c2_i32_131 = arith.constant 2 : i32
    %506 = arith.muli %438, %c2_i32_131 : i32
    %507 = arith.index_cast %506 : i32 to index
    %c0_132 = arith.constant 0 : index
    %508 = vector.load %arg8[%507, %c0_132] : memref<16x32xf32, #tpu.memory_space<vmem>>, vector<2x32xf32>
    tpu.vector_store %arg8[%507, %c0_132], %502 {strides = array<i32>} : memref<16x32xf32, #tpu.memory_space<vmem>>, vector<2x32xf32>,
    %c7_i32_133 = arith.constant 7 : i32
    %c7_i32_134 = arith.constant 7 : i32
    %509 = arith.subi %c7_i32_134, %c7_i32_133 : i32
    %c2_i32_135 = arith.constant 2 : i32
    %510 = arith.muli %c7_i32_133, %c2_i32_135 : i32
    %511 = arith.index_cast %510 : i32 to index
    %c0_136 = arith.constant 0 : index
    %512 = vector.load %arg11[%511, %c0_136] : memref<16x192xf32, #tpu.memory_space<vmem>>, vector<2x96xf32>
    %c2_i32_137 = arith.constant 2 : i32
    %513 = arith.muli %509, %c2_i32_137 : i32
    %514 = arith.index_cast %513 : i32 to index
    %c96_138 = arith.constant 96 : index
    %515 = vector.load %arg11[%514, %c96_138] : memref<16x192xf32, #tpu.memory_space<vmem>>, vector<2x96xf32>
    %cst_139 = arith.constant dense<0.000000e+00> : vector<2x96xf32>
    %516 = tpu.matmul %473, %7, %cst_139 {dimension_numbers = #tpu.dot_dimension_numbers<[1], [0], [0], [1], [0, 0, 1, 1], [], []>} : vector<2x32xf32>, vector<32x96xf32>, vector<2x96xf32> -> vector<2x96xf32>
    %517 = vector.broadcast %8 : vector<1x96xf32> to vector<2x96xf32>
    %518 = arith.addf %516, %517 : vector<2x96xf32>
    %519 = vector.extract_strided_slice %512 {offsets = [0, 0], sizes = [2, 32], strides = [1, 1]} : vector<2x96xf32> to vector<2x32xf32>
    %520 = vector.extract_strided_slice %518 {offsets = [0, 0], sizes = [2, 32], strides = [1, 1]} : vector<2x96xf32> to vector<2x32xf32>
    %521 = arith.addf %519, %520 : vector<2x32xf32>
    %522 = arith.negf %521 : vector<2x32xf32>
    %523 = math.exp %522 : vector<2x32xf32>
    %cst_140 = arith.constant 1.000000e+00 : f32
    %524 = vector.broadcast %cst_140 : f32 to vector<2x32xf32>
    %525 = arith.addf %524, %523 : vector<2x32xf32>
    %526 = arith.divf %524, %525 : vector<2x32xf32>
    %527 = vector.extract_strided_slice %512 {offsets = [0, 32], sizes = [2, 32], strides = [1, 1]} : vector<2x96xf32> to vector<2x32xf32>
    %528 = vector.extract_strided_slice %518 {offsets = [0, 32], sizes = [2, 32], strides = [1, 1]} : vector<2x96xf32> to vector<2x32xf32>
    %529 = arith.addf %527, %528 : vector<2x32xf32>
    %530 = arith.negf %529 : vector<2x32xf32>
    %531 = math.exp %530 : vector<2x32xf32>
    %cst_141 = arith.constant 1.000000e+00 : f32
    %532 = vector.broadcast %cst_141 : f32 to vector<2x32xf32>
    %533 = arith.addf %532, %531 : vector<2x32xf32>
    %534 = arith.divf %532, %533 : vector<2x32xf32>
    %535 = vector.extract_strided_slice %512 {offsets = [0, 64], sizes = [2, 32], strides = [1, 1]} : vector<2x96xf32> to vector<2x32xf32>
    %536 = vector.extract_strided_slice %518 {offsets = [0, 64], sizes = [2, 32], strides = [1, 1]} : vector<2x96xf32> to vector<2x32xf32>
    %537 = arith.mulf %526, %536 : vector<2x32xf32>
    %538 = arith.addf %535, %537 : vector<2x32xf32>
    %539 = math.tanh %538 : vector<2x32xf32>
    %cst_142 = arith.constant 1.000000e+00 : f32
    %540 = vector.broadcast %cst_142 : f32 to vector<2x32xf32>
    %541 = arith.subf %540, %534 : vector<2x32xf32>
    %542 = arith.mulf %541, %539 : vector<2x32xf32>
    %543 = arith.mulf %534, %473 : vector<2x32xf32>
    %544 = arith.addf %542, %543 : vector<2x32xf32>
    %cst_143 = arith.constant dense<0.000000e+00> : vector<2x96xf32>
    %545 = tpu.matmul %502, %9, %cst_143 {dimension_numbers = #tpu.dot_dimension_numbers<[1], [0], [0], [1], [0, 0, 1, 1], [], []>} : vector<2x32xf32>, vector<32x96xf32>, vector<2x96xf32> -> vector<2x96xf32>
    %546 = vector.broadcast %10 : vector<1x96xf32> to vector<2x96xf32>
    %547 = arith.addf %545, %546 : vector<2x96xf32>
    %548 = vector.extract_strided_slice %515 {offsets = [0, 0], sizes = [2, 32], strides = [1, 1]} : vector<2x96xf32> to vector<2x32xf32>
    %549 = vector.extract_strided_slice %547 {offsets = [0, 0], sizes = [2, 32], strides = [1, 1]} : vector<2x96xf32> to vector<2x32xf32>
    %550 = arith.addf %548, %549 : vector<2x32xf32>
    %551 = arith.negf %550 : vector<2x32xf32>
    %552 = math.exp %551 : vector<2x32xf32>
    %cst_144 = arith.constant 1.000000e+00 : f32
    %553 = vector.broadcast %cst_144 : f32 to vector<2x32xf32>
    %554 = arith.addf %553, %552 : vector<2x32xf32>
    %555 = arith.divf %553, %554 : vector<2x32xf32>
    %556 = vector.extract_strided_slice %515 {offsets = [0, 32], sizes = [2, 32], strides = [1, 1]} : vector<2x96xf32> to vector<2x32xf32>
    %557 = vector.extract_strided_slice %547 {offsets = [0, 32], sizes = [2, 32], strides = [1, 1]} : vector<2x96xf32> to vector<2x32xf32>
    %558 = arith.addf %556, %557 : vector<2x32xf32>
    %559 = arith.negf %558 : vector<2x32xf32>
    %560 = math.exp %559 : vector<2x32xf32>
    %cst_145 = arith.constant 1.000000e+00 : f32
    %561 = vector.broadcast %cst_145 : f32 to vector<2x32xf32>
    %562 = arith.addf %561, %560 : vector<2x32xf32>
    %563 = arith.divf %561, %562 : vector<2x32xf32>
    %564 = vector.extract_strided_slice %515 {offsets = [0, 64], sizes = [2, 32], strides = [1, 1]} : vector<2x96xf32> to vector<2x32xf32>
    %565 = vector.extract_strided_slice %547 {offsets = [0, 64], sizes = [2, 32], strides = [1, 1]} : vector<2x96xf32> to vector<2x32xf32>
    %566 = arith.mulf %555, %565 : vector<2x32xf32>
    %567 = arith.addf %564, %566 : vector<2x32xf32>
    %568 = math.tanh %567 : vector<2x32xf32>
    %cst_146 = arith.constant 1.000000e+00 : f32
    %569 = vector.broadcast %cst_146 : f32 to vector<2x32xf32>
    %570 = arith.subf %569, %563 : vector<2x32xf32>
    %571 = arith.mulf %570, %568 : vector<2x32xf32>
    %572 = arith.mulf %563, %502 : vector<2x32xf32>
    %573 = arith.addf %571, %572 : vector<2x32xf32>
    %c2_i32_147 = arith.constant 2 : i32
    %574 = arith.muli %c7_i32_133, %c2_i32_147 : i32
    %575 = arith.index_cast %574 : i32 to index
    %c0_148 = arith.constant 0 : index
    %576 = vector.load %arg7[%575, %c0_148] : memref<16x32xf32, #tpu.memory_space<vmem>>, vector<2x32xf32>
    tpu.vector_store %arg7[%575, %c0_148], %544 {strides = array<i32>} : memref<16x32xf32, #tpu.memory_space<vmem>>, vector<2x32xf32>,
    %c2_i32_149 = arith.constant 2 : i32
    %577 = arith.muli %509, %c2_i32_149 : i32
    %578 = arith.index_cast %577 : i32 to index
    %c0_150 = arith.constant 0 : index
    %579 = vector.load %arg8[%578, %c0_150] : memref<16x32xf32, #tpu.memory_space<vmem>>, vector<2x32xf32>
    tpu.vector_store %arg8[%578, %c0_150], %573 {strides = array<i32>} : memref<16x32xf32, #tpu.memory_space<vmem>>, vector<2x32xf32>,
    %c8_i32 = arith.constant 8 : i32
    %c0_151 = arith.constant 0 : index
    %c0_152 = arith.constant 0 : index
    %580 = vector.load %arg9[%c0_151, %c0_152] : memref<2x32xf32, #tpu.memory_space<vmem>>, vector<2x32xf32>
    tpu.vector_store %arg9[%c0_151, %c0_152], %544 {strides = array<i32>} : memref<2x32xf32, #tpu.memory_space<vmem>>, vector<2x32xf32>,
    %c0_153 = arith.constant 0 : index
    %c0_154 = arith.constant 0 : index
    %581 = vector.load %arg10[%c0_153, %c0_154] : memref<2x32xf32, #tpu.memory_space<vmem>>, vector<2x32xf32>
    tpu.vector_store %arg10[%c0_153, %c0_154], %573 {strides = array<i32>} : memref<2x32xf32, #tpu.memory_space<vmem>>, vector<2x32xf32>,
    return
  }
}

</mosaic_0001>

<bundles_post_ra>
// kernel: tpu_custom_call.1
= control target key start
LH: loop header
LB: loop body
LE: loop exit
PB: predicated region body
PF: predicated region fallthrough
CT: control target
= control target key end

     0   :  { %16 = vsyncpa [#allocation4], 0  ;;  %s2426_s0 = inlined_call_operand.hbm [shape: f32[16,16], index: 0, kind: input, shape index: {}]   ;;  %s2427_s1 = inlined_call_operand.hbm [shape: f32[16,192], index: 1, kind: input, shape index: {}]   ;;  %s2428_s2 = inlined_call_operand.hbm [shape: f32[1,192], index: 2, kind: input, shape index: {}]   ;;  %s2429_s3 = inlined_call_operand.hbm [shape: f32[32,96], index: 3, kind: input, shape index: {}]   ;;  %s2430_s4 = inlined_call_operand.vmem [shape: f32[1,96], index: 4, kind: input, shape index: {}]   ;;  %s2431_s5 = inlined_call_operand.hbm [shape: f32[32,96], index: 5, kind: input, shape index: {}]   ;;  %s2432_s6 = inlined_call_operand.vmem [shape: f32[1,96], index: 6, kind: input, shape index: {}]   ;;  %s2433_s7 = inlined_call_operand.hbm [shape: f32[16,32], index: 7, kind: output, shape index: {0}]   ;;  %s2434_s8 = inlined_call_operand.hbm [shape: f32[16,32], index: 8, kind: output, shape index: {1}]   ;;  %s2435_s9 = inlined_call_operand.hbm [shape: f32[2,32], index: 9, kind: output, shape index: {2}]   ;;  %s2436_s10 = inlined_call_operand.hbm [shape: f32[2,32], index: 10, kind: output, shape index: {3}]  }
   0x1   :  { %17 = vsyncpa [#allocation7], 0 }
   0x2   :  { %18 = vsyncpa [#allocation10], 0 }
   0x3   :  { %19 = vsyncpa [#allocation5], 0 }
   0x4   :  { %20 = vsyncpa [#allocation14], 0  ;;  %s39_s15 = sshll.u32 %s2427_s1, 4  ;;  %s40_s15 = int_to_ptr.hbm [resolvable:$true] %s39_s15 }
   0x5   :  { %21 = vsyncpa [#allocation17], 0  ;;  %s1993_s16 = smov [#allocation6]   ;;  %s1994_s18 = smov 256  }
   0x6   :  { %s41_s17 = sshll.u32 %s1993_s16, 4  ;;  %s1995_s19 = smov 16   ;;  %s42_s17 = int_to_ptr.vmem [resolvable:$true] %s41_s17 }
   0x7   :  { %47 = dma.hbm_to_vmem [thread:$0]  %s40_s15, 512, %s42_s17, [#allocation7], %s1994_s18, %s1994_s18, %s1995_s19  }
   0x8   :  { %s63_s22 = sshll.u32 %s2429_s3, 4  ;;  %s1996_s23 = smov [#allocation9]   ;;  %s64_s22 = int_to_ptr.hbm [resolvable:$true] %s63_s22 }
   0x9   :  { %s65_s24 = sshll.u32 %s1996_s23, 4  ;;  %s26_s27 = sshll.u32 %s2426_s0, 4  ;;  %s66_s24 = int_to_ptr.vmem [resolvable:$true] %s65_s24  ;;  %s27_s27 = int_to_ptr.hbm [resolvable:$true] %s26_s27 }
   0xa   :  { %s1997_s1 = smov 128   ;;  %s1998_s28 = smov 8  }
   0xb   :  { %71 = dma.hbm_to_vmem [thread:$0]  %s64_s22, 512, %s66_s24, [#allocation10], %s1997_s1, %s1997_s1, %s1998_s28  }
   0xc   :  { %s53_s11 = sshll.u32 %s2428_s2, 4  ;;  %s1999_s3 = smov [#allocation3]   ;;  %s54_s11 = int_to_ptr.hbm [resolvable:$true] %s53_s11 }
   0xd   :  { %s28_s12 = sshll.u32 %s1999_s3, 4  ;;  %s2000_s0 = smov [#allocation8]   ;;  %s29_s12 = int_to_ptr.vmem [resolvable:$true] %s28_s12 }
   0xe   :  { %34 = dma.hbm_to_vmem [thread:$0]  %s27_s27, 256, %s29_s12, [#allocation4], %s1997_s1, %s1997_s1, %s1998_s28  }
   0xf   :  { %s55_s13 = sshll.u32 %s2000_s0, 4  ;;  %s78_s16 = sshll.u32 %s2431_s5, 4  ;;  %s56_s13 = int_to_ptr.vmem [resolvable:$true] %s55_s13  ;;  %s79_s16 = int_to_ptr.hbm [resolvable:$true] %s78_s16 }
  0x10   :  { %58 = dma.hbm_to_vmem [thread:$0]  %s54_s11, 32, %s56_s13, [#allocation7]  }
  0x11   :  { %s2001_s17 = smov [#allocation11]  }
  0x12   :  { %s80_s18 = sshll.u32 %s2001_s17, 4  ;;  %s81_s18 = int_to_ptr.vmem [resolvable:$true] %s80_s18 }
  0x13   :  { %86 = dma.hbm_to_vmem [thread:$0]  %s79_s16, 512, %s81_s18, [#allocation10], %s1997_s1, %s1997_s1, %s1998_s28  }
  0x14   :  { %1981 = dma.done.wait [#allocation4], 256  }
  0x15   :  { %1982 = vsyncadd [#allocation4], 4294967040 }
  0x16   :  { %1983 = dma.done.wait [#allocation7], 544  }
  0x17   :  { %1984 = vsyncadd [#allocation7], 4294966752 }
  0x18   :  { %1985 = dma.done.wait [#allocation10], 1024  }
  0x19   :  { %1986 = vsyncadd [#allocation10], 4294966272  ;;  %v2089_v0 = vld [vmem:[#allocation9 + $0x18] sm:$0xff]  ;;  %v113_v2 = vld [vmem:[#allocation6 + $0x10] sm:$0xff]  ;;  %vm121_vm0 = vcmask 130048   ;;  %v2002_v11 = vmov 0.0  }
  0x1a   :  { %v2091_v1 = vld [vmem:[#allocation11 + $0x18] sm:$0xff]  ;;  %211 = vmatpush.msra.mxu2 %v2089_v0  ;;  %v2095_v3 = vld [vmem:[#allocation9 + $0x10] sm:$0xff]  ;;  %142 = vmatpush.msra.mxu0 %v113_v2  ;;  %v2099_v6 = vld [vmem:[#allocation9 + $0x8] sm:$0xff]  ;;  %s2003_s21 = smov 64   ;;  %s2004_s22 = smov 96   ;;  %vm175_vm9 = vcmask 523264  }
  0x1b   :  { %273 = vmatpush.msra.mxu3 %v2091_v1  ;;  %v2097_v4 = vld [vmem:[#allocation11 + $0x10] sm:$0xff]  ;;  %v111_v5 = vld [vmem:[#allocation6] sm:$0xff]  ;;  %v2101_v7 = vld [vmem:[#allocation11 + $0x8] sm:$0xff]  ;;  %s2005_s23 = smov 32   ;;  %vm350_vm14 = vcmask 261126   ;;  %vm195_vm15 = vcmask 261120  }
  0x1c   :  { %212 = vmatpush.msra.mxu2 %v2095_v3  ;;  %v2105_v8 = vld [vmem:[#allocation3] sm:$0xff]  ;;  %v2107_v9 = vld [vmem:[#allocation9] sm:$0xff]  ;;  %143 = vmatpush.msra.mxu0 %v111_v5  ;;  %v110_v12 = vld [vmem:[#allocation3 + $0x8] sm:$0xff]  ;;  %s1523_s29 = sshll.u32 %s2434_s8, 4  ;;  %s2006_s30 = smov [#allocation13]   ;;  %s1524_s29 = int_to_ptr.hbm [resolvable:$true] %s1523_s29 }
  0x1d   :  { %274 = vmatpush.msra.mxu3 %v2097_v4  ;;  %v2109_v10 = vld [vmem:[#allocation11] sm:$0xff]  ;;  %1574 = vmatmul.msk.f32.vlgmr.msra.gmra.mxu0 %vm121_vm0, %v2105_v8  ;;  %v2142_v13 = vld [vmem:[#allocation8] sm:$0x3]  ;;  %v2148_v17 = vld [vmem:[%s2430_s4] ss:$0 sm:$0xff]  ;;  %s1521_s11 = sshll.u32 %s2006_s30, 4  ;;  %s1522_s11 = int_to_ptr.vmem [resolvable:$true] %s1521_s11 }
  0x1e   :  { %213 = vmatpush.msra.mxu2 %v2099_v6  ;;  %537 = vmatpush.msrb.mxu0 %v2089_v0  ;;  %v117_v14 = vperm.slane %v2142_v13, 0  ;;  %v2153_v18 = vld [vmem:[%s2432_s6] ss:$0 sm:$0xff]  ;;  %v114_v31 = vld [vmem:[#allocation6 + $0x18] sm:$0xff]  ;;  %v112_v32 = vld [vmem:[#allocation6 + $0x8] sm:$0xff]  ;;  %v118_v63 = vperm.slane %v2142_v13, 1 }
  0x1f   :  { %275 = vmatpush.msra.mxu3 %v2101_v7  ;;  %165 = vmatpush.msra.mxu1 %v114_v31  ;;  %s2007_s3 = smov [#allocation16]   ;;  %s1548_s14 = sshll.u32 %s2436_s10, 4  ;;  %s1549_s14 = int_to_ptr.hbm [resolvable:$true] %s1548_s14 }
  0x20   :  { %214 = vmatpush.msra.mxu2 %v2107_v9  ;;  %538 = vmatpush.msrb.mxu0 %v2095_v3  ;;  %s1546_s12 = sshll.u32 %s2007_s3, 4  ;;  %s2008_s8 = smov [#allocation12]   ;;  %s1547_s12 = int_to_ptr.vmem [resolvable:$true] %s1546_s12 }
  0x21   :  { %276 = vmatpush.msra.mxu3 %v2109_v10  ;;  %215 = vmatmul.f32.vlgmr.msra.gmra.mxu2 %v2002_v11  ;;  %s1508_s10 = sshll.u32 %s2008_s8, 4  ;;  %s1510_s17 = sshll.u32 %s2433_s7, 4  ;;  %s1509_s10 = int_to_ptr.vmem [resolvable:$true] %s1508_s10  ;;  %s1511_s17 = int_to_ptr.hbm [resolvable:$true] %s1510_s17 }
  0x22   :  { %277 = vmatmul.f32.vlgmr.msra.gmra.mxu3 %v2002_v11  ;;  %369 = vmatpush.msrb.mxu2 %v2089_v0  ;;  %s2009_s18 = smov [#allocation15]   ;;  %s1537_s20 = sshll.u32 %s2435_s9, 4  ;;  %s1538_s20 = int_to_ptr.hbm [resolvable:$true] %s1537_s20 }
  0x23   :  { %436 = vmatpush.msrb.mxu3 %v2091_v1  ;;  %539 = vmatpush.msrb.mxu0 %v2099_v6  ;;  %s1535_s2 = sshll.u32 %s2009_s18, 4  ;;  %s1536_s2 = int_to_ptr.vmem [resolvable:$true] %s1535_s2 }
  0x24   :  { %370 = vmatpush.msrb.mxu2 %v2095_v3  ;;  %166 = vmatpush.msra.mxu1 %v112_v32 }
  0x25   :  { %437 = vmatpush.msrb.mxu3 %v2097_v4  ;;  %1575 = vmatmul.msk.f32.gmra.mxu0 %vm121_vm0, %v110_v12 }
  0x26   :  { %371 = vmatpush.msrb.mxu2 %v2099_v6  ;;  %540 = vmatpush.msrb.mxu0 %v2107_v9 }
  0x27   :  { %438 = vmatpush.msrb.mxu3 %v2101_v7  ;;  %1576 = vmatmul.msk.f32.vlgmr.msra.gmra.mxu1 %vm121_vm0, %v2105_v8 }
  0x28   :  { %372 = vmatpush.msrb.mxu2 %v2107_v9  ;;  %867 = vmatpush.msra.mxu0 %v2089_v0 }
  0x29   :  { %439 = vmatpush.msrb.mxu3 %v2109_v10  ;;  %604 = vmatpush.msrb.mxu1 %v2091_v1 }
  0x2a   :  { %703 = vmatpush.msra.mxu2 %v2089_v0  ;;  %868 = vmatpush.msra.mxu0 %v2095_v3 }
  0x2b   :  { %770 = vmatpush.msra.mxu3 %v2091_v1  ;;  %605 = vmatpush.msrb.mxu1 %v2097_v4 }
  0x2c   :  { %704 = vmatpush.msra.mxu2 %v2095_v3  ;;  %869 = vmatpush.msra.mxu0 %v2099_v6 }
  0x2d   :  { %771 = vmatpush.msra.mxu3 %v2097_v4  ;;  %606 = vmatpush.msrb.mxu1 %v2101_v7 }
  0x2e   :  { %705 = vmatpush.msra.mxu2 %v2099_v6  ;;  %870 = vmatpush.msra.mxu0 %v2107_v9 }
  0x2f   :  { %772 = vmatpush.msra.mxu3 %v2101_v7  ;;  %607 = vmatpush.msrb.mxu1 %v2109_v10 }
  0x30   :  { %706 = vmatpush.msra.mxu2 %v2107_v9  ;;  %1577 = vmatmul.msk.f32.gmra.mxu1 %vm121_vm0, %v110_v12  ;;  %vm348_vm0 = vcmask 254976  }
  0x31   :  { %773 = vmatpush.msra.mxu3 %v2109_v10  ;;  %930 = vmatpush.msra.mxu1 %v2091_v1 }
  0x33   :  { %931 = vmatpush.msra.mxu1 %v2097_v4 }
  0x35   :  { %932 = vmatpush.msra.mxu1 %v2101_v7 }
  0x37   :  { %933 = vmatpush.msra.mxu1 %v2109_v10 }
  0x9a   :  { %v145_v15 = vpop.f32.mrf.mxu0 }
  0x9b   :  { %v146_v16 = vadd.f32 %v145_v15, %v117_v14 }
  0x9d   :  { %174 = vst [vmem:[#allocation2] sm:$0xff] %v146_v16 }
  0xa2   :  { %v148_v23 = vpop.f32.mrf.mxu0 }
  0xa3   :  { %v149_v24 = vadd.f32 %v148_v23, %v117_v14 }
  0xa4   :  { %v216_v19 = vpop.f32.mrf.mxu2  ;;  %v2160_v26 = vld [vmem:[#allocation2] sm:$0x3]  ;;  %v168_v2 = vpop.f32.mrf.mxu1 }
  0xa5   :  { %v278_v20 = vpop.f32.mrf.mxu3  ;;  %v217_v21 = vadd.f32 %v2148_v17, %v216_v19  ;;  %177 = vst [vmem:[#allocation2 + $0x10] sm:$0xff] %v149_v24  ;;  %v169_v5 = vadd.f32 %v168_v2, %v118_v63 }
  0xa6   :  { %v279_v22 = vadd.f32 %v2153_v18, %v278_v20 }
  0xa7   :  { %240 = vrot.lane.b32.xlu0 %v217_v21, %s2003_s21  ;;  %v219_v27 = vadd.f32 %v217_v21, %v2160_v26  ;;  %176 = vst.msk [vmem:[#allocation2 + $0x8] sm:$0xff] %vm175_vm9, %v169_v5 }
  0xa8   :  { %v282_v25 = vrot.slane %v279_v22, 2 }
  0xa9   :  { %v1578_v28 = vmul.f32 -1.442695, %v219_v27 }
  0xaa   :  { %283 = vrot.lane.b32.xlu1 %v282_v25, %s2004_s22  ;;  %326 = vrot.lane.b32.xlu2 %v282_v25, %s2005_s23 }
  0xab   :  { %1635 = vpow2.f32 %v1578_v28 }
  0xac   :  { %v190_v44 = vld [vmem:[#allocation2 + $0x10] sm:$0xc0] }
  0xad   :  { %v171_v8 = vpop.f32.mrf.mxu1 }
  0xae   :  { %v172_v11 = vadd.f32 %v171_v8, %v118_v63 }
  0xb0   :  { %178 = vst.msk [vmem:[#allocation2 + $0x18] sm:$0xff] %vm175_vm9, %v172_v11 }
  0xb1   :  { %v1636_v29 = vpop.eup %1635 }
  0xb2   :  { %v223_v30 = vadd.f32 1.0, %v1636_v29 }
  0xb4   :  { %1637 = vrcp.f32 %v223_v30  ;;  %v235_v38 = vand.u32 2147483648, %v223_v30  ;;  %vm229_vm2 = vweird.f32 %v223_v30  ;;  %v233_v39 = vand.u32 2147483647, %v223_v30 }
  0xb6   :  { %v236_v41 = vor.u32 1.1754944e-38, %v235_v38  ;;  %vm234_vm4 = vcmp.eq.f32.partialorder %v233_v39, 8.507059e+37 }
  0xb7   :  { %v191_v16 = vld [vmem:[#allocation2 + $0x18] sm:$0xc0] }
  0xba   :  { %v1638_v33 = vpop.eup %1637 }
  0xbb   :  { %v225_v34 = vmul.f32 %v1638_v33, %v223_v30  ;;  %vm230_vm1 = vweird.f32 %v1638_v33 }
  0xbc   :  { %vm231_vm3 = vmor %vm229_vm2, %vm230_vm1 }
  0xbd   :  { %v226_v35 = vsub.f32 1.0, %v225_v34 }
  0xbf   :  { %v227_v36 = vmul.f32 %v1638_v33, %v226_v35 }
  0xc1   :  { %v228_v37 = vadd.f32 %v1638_v33, %v227_v36 }
  0xc3   :  { %v232_v40 = vsel %vm231_vm3, %v1638_v33, %v228_v37 }
  0xc4   :  { %v237_v43 = vsel %vm234_vm4, %v236_v41, %v232_v40 }
  0xc5   :  { %v250_v25 = vsub.f32 1.0, %v237_v43 }
 0x104   :  { %v327_v59 = vpop.permute.xlu2 %326 }
 0x119   :  { %v241_v42 = vpop.permute.xlu0 %240 }
 0x11a   :  { %v243_v45 = vmul.f32 %v241_v42, %v237_v43 }
 0x11c   :  { %v284_v46 = vpop.permute.xlu1 %283  ;;  %245 = vrot.lane.b32.xlu0 %v243_v45, %s2003_s21 }
 0x11d   :  { %v286_v47 = vadd.f32 %v284_v46, %v190_v44  ;;  %v306_v13 = vadd.f32 %v284_v46, %v191_v16 }
 0x11f   :  { %v1579_v48 = vmul.f32 -1.442695, %v286_v47  ;;  %v1580_v22 = vmul.f32 -1.442695, %v306_v13 }
 0x121   :  { %1639 = vpow2.f32 %v1579_v48 }
 0x127   :  { %v1640_v49 = vpop.eup %1639 }
 0x128   :  { %v290_v50 = vadd.f32 1.0, %v1640_v49 }
 0x12a   :  { %1641 = vrcp.f32 %v290_v50  ;;  %v302_v53 = vand.u32 2147483648, %v290_v50  ;;  %vm296_vm5 = vweird.f32 %v290_v50  ;;  %v300_v55 = vand.u32 2147483647, %v290_v50 }
 0x12c   :  { %v303_v57 = vor.u32 1.1754944e-38, %v302_v53  ;;  %vm301_vm8 = vcmp.eq.f32.partialorder %v300_v55, 8.507059e+37  ;;  %v352_v53 = vld [vmem:[#allocation2] sm:$0xc] }
 0x130   :  { %v1642_v51 = vpop.eup %1641 }
 0x131   :  { %v292_v52 = vmul.f32 %v1642_v51, %v290_v50  ;;  %vm297_vm6 = vweird.f32 %v1642_v51 }
 0x132   :  { %vm298_vm7 = vmor %vm296_vm5, %vm297_vm6 }
 0x133   :  { %v293_v54 = vsub.f32 1.0, %v292_v52 }
 0x135   :  { %v294_v56 = vmul.f32 %v1642_v51, %v293_v54 }
 0x137   :  { %v295_v58 = vadd.f32 %v1642_v51, %v294_v56 }
 0x139   :  { %v299_v60 = vsel %vm298_vm7, %v1642_v51, %v295_v58 }
 0x13a   :  { %v304_v61 = vsel %vm301_vm8, %v303_v57, %v299_v60 }
 0x13b   :  { %v329_v62 = vmul.f32 %v327_v59, %v304_v61 }
 0x13d   :  { %331 = vrot.lane.b32.xlu0 %v329_v62, %s2003_s21 }
 0x18e   :  { %v246_v12 = vpop.permute.xlu0 %245 }
 0x18f   :  { %v248_v14 = vadd.f32 %v246_v12, %v2160_v26  ;;  %v256_v26 = vmul.f32 0.0, %v237_v43 }
 0x191   :  { %1643 = vtanh.f32 %v248_v14 }
 0x197   :  { %v1644_v15 = vpop.eup %1643 }
 0x198   :  { %252 = vrot.lane.b32.xlu1 %v1644_v15, %s2004_s22 }
 0x1af   :  { %v332_v19 = vpop.permute.xlu0 %331 }
 0x1b0   :  { %v334_v20 = vadd.f32 %v332_v19, %v191_v16 }
 0x1b2   :  { %1645 = vtanh.f32 %v334_v20  ;;  %v353_v20 = vld [vmem:[#allocation2 + $0x10] sm:$0x30] }
 0x1b3   :  { %1647 = vpow2.f32 %v1580_v22 }
 0x1b8   :  { %v1646_v21 = vpop.eup %1645 }
 0x1b9   :  { %338 = vrot.lane.b32.xlu1 %v1646_v21, %s2004_s22  ;;  %v1648_v23 = vpop.eup %1647 }
 0x1ba   :  { %v310_v24 = vadd.f32 1.0, %v1648_v23 }
 0x1bc   :  { %1649 = vrcp.f32 %v310_v24  ;;  %vm316_vm10 = vweird.f32 %v310_v24  ;;  %v322_v34 = vand.u32 2147483648, %v310_v24  ;;  %v320_v36 = vand.u32 2147483647, %v310_v24 }
 0x1be   :  { %v323_v37 = vor.u32 1.1754944e-38, %v322_v34  ;;  %vm321_vm13 = vcmp.eq.f32.partialorder %v320_v36, 8.507059e+37 }
 0x1c2   :  { %v1650_v30 = vpop.eup %1649 }
 0x1c3   :  { %v312_v31 = vmul.f32 %v1650_v30, %v310_v24  ;;  %vm317_vm11 = vweird.f32 %v1650_v30 }
 0x1c4   :  { %vm318_vm12 = vmor %vm316_vm10, %vm317_vm11 }
 0x1c5   :  { %v313_v32 = vsub.f32 1.0, %v312_v31 }
 0x1c7   :  { %v314_v33 = vmul.f32 %v1650_v30, %v313_v32 }
 0x1c9   :  { %v315_v35 = vadd.f32 %v1650_v30, %v314_v33 }
 0x1cb   :  { %v319_v38 = vsel %vm318_vm12, %v1650_v30, %v315_v35 }
 0x1cc   :  { %v324_v39 = vsel %vm321_vm13, %v323_v37, %v319_v38  ;;  %vm515_vm13 = vcmask 259076  }
 0x1cd   :  { %v336_v40 = vsub.f32 1.0, %v324_v39  ;;  %v342_v42 = vmul.f32 0.0, %v324_v39 }
 0x20a   :  { %v253_v27 = vpop.permute.xlu1 %252 }
 0x20b   :  { %v255_v28 = vmul.f32 %v253_v27, %v250_v25 }
 0x20d   :  { %v2180_v29 = vadd.f32 %v256_v26, %v255_v28 }
 0x20f   :  { %345 = vrot.lane.b32.xlu2 %v2180_v29, %s2004_s22  ;;  %v416_v8 = vrot.slane %v2180_v29, 6 }
 0x22b   :  { %v339_v41 = vpop.permute.xlu1 %338 }
 0x22c   :  { %v341_v43 = vmul.f32 %v339_v41, %v336_v40 }
 0x22e   :  { %v2184_v44 = vadd.f32 %v342_v42, %v341_v43 }
 0x230   :  { %351 = vst.msk [vmem:[#allocation13 + $0x8] sm:$0xc0] %vm350_vm14, %v2184_v44  ;;  %v421_v45 = vrot.slane %v2184_v44, 6 }
 0x232   :  { %1583 = vmatmul.msk.f32.vlgmr.msrb.gmra.mxu3 %vm195_vm15, %v421_v45  ;;  %v354_v45 = vld [vmem:[#allocation2 + $0x18] sm:$0x30] }
 0x233   :  { %1093 = vmatpush.msrb.mxu3 %v2091_v1 }
 0x235   :  { %1094 = vmatpush.msrb.mxu3 %v2097_v4 }
 0x237   :  { %1095 = vmatpush.msrb.mxu3 %v2101_v7 }
 0x239   :  { %1096 = vmatpush.msrb.mxu3 %v2109_v10 }
 0x269   :  { %v346_v46 = vpop.permute.xlu2 %345 }
 0x26a   :  { %349 = vst.msk [vmem:[#allocation12] sm:$0x3] %vm348_vm0, %v346_v46  ;;  %1581 = vmatmul.msk.f32.vlgmr.msrb.gmra.mxu2 %vm195_vm15, %v346_v46 }
 0x26b   :  { %1026 = vmatpush.msrb.mxu2 %v2089_v0 }
 0x26d   :  { %1027 = vmatpush.msrb.mxu2 %v2095_v3 }
 0x26f   :  { %1028 = vmatpush.msrb.mxu2 %v2099_v6 }
 0x271   :  { %1029 = vmatpush.msrb.mxu2 %v2107_v9 }
 0x2b5   :  { %v441_v47 = vpop.f32.mrf.mxu3 }
 0x2b6   :  { %v442_v48 = vadd.f32 %v2153_v18, %v441_v47 }
 0x2b8   :  { %v445_v49 = vrot.slane %v442_v48, 4 }
 0x2ba   :  { %446 = vrot.lane.b32.xlu1 %v445_v49, %s2004_s22 }
 0x2ed   :  { %v374_v50 = vpop.f32.mrf.mxu2 }
 0x2ee   :  { %v375_v51 = vadd.f32 %v2148_v17, %v374_v50 }
 0x2f0   :  { %v378_v52 = vrot.slane %v375_v51, 6 }
 0x2f2   :  { %v380_v54 = vadd.f32 %v378_v52, %v352_v53  ;;  %400 = vrot.lane.b32.xlu2 %v378_v52, %s2003_s21 }
 0x2f4   :  { %v1582_v55 = vmul.f32 -1.442695, %v380_v54 }
 0x2f6   :  { %1651 = vpow2.f32 %v1582_v55 }
 0x2fc   :  { %v1652_v56 = vpop.eup %1651 }
 0x2fd   :  { %v384_v57 = vadd.f32 1.0, %v1652_v56 }
 0x2ff   :  { %1653 = vrcp.f32 %v384_v57  ;;  %v396_v61 = vand.u32 2147483648, %v384_v57  ;;  %v394_v63 = vand.u32 2147483647, %v384_v57  ;;  %vm390_vm2 = vweird.f32 %v384_v57 }
 0x301   :  { %v397_v5 = vor.u32 1.1754944e-38, %v396_v61  ;;  %vm395_vm4 = vcmp.eq.f32.partialorder %v394_v63, 8.507059e+37 }
 0x305   :  { %v1654_v58 = vpop.eup %1653 }
 0x306   :  { %v386_v59 = vmul.f32 %v1654_v58, %v384_v57  ;;  %vm391_vm1 = vweird.f32 %v1654_v58 }
 0x307   :  { %vm392_vm3 = vmor %vm390_vm2, %vm391_vm1 }
 0x308   :  { %v387_v60 = vsub.f32 1.0, %v386_v59 }
 0x30a   :  { %v388_v62 = vmul.f32 %v1654_v58, %v387_v60 }
 0x30c   :  { %v389_v2 = vadd.f32 %v1654_v58, %v388_v62 }
 0x30e   :  { %v393_v11 = vsel %vm392_vm3, %v1654_v58, %v389_v2 }
 0x30f   :  { %v398_v12 = vsel %vm395_vm4, %v397_v5, %v393_v11  ;;  %v505_v5 = vrot.slane %v2184_v44, 2 }
 0x310   :  { %v418_v14 = vmul.f32 %v416_v8, %v398_v12  ;;  %v410_v39 = vsub.f32 1.0, %v398_v12 }
 0x32c   :  { %v447_v19 = vpop.permute.xlu1 %446 }
 0x32d   :  { %v449_v21 = vadd.f32 %v447_v19, %v353_v20 }
 0x32f   :  { %v1584_v13 = vmul.f32 -1.442695, %v449_v21 }
 0x331   :  { %1655 = vpow2.f32 %v1584_v13 }
 0x337   :  { %v1656_v22 = vpop.eup %1655 }
 0x338   :  { %v453_v23 = vadd.f32 1.0, %v1656_v22  ;;  %v517_v22 = vld [vmem:[#allocation2] sm:$0x30] }
 0x33a   :  { %1657 = vrcp.f32 %v453_v23  ;;  %v465_v32 = vand.u32 2147483648, %v453_v23  ;;  %vm459_vm6 = vweird.f32 %v453_v23  ;;  %v463_v33 = vand.u32 2147483647, %v453_v23 }
 0x33c   :  { %v466_v35 = vor.u32 1.1754944e-38, %v465_v32  ;;  %vm464_vm8 = vcmp.eq.f32.partialorder %v463_v33, 8.507059e+37 }
 0x340   :  { %v1658_v24 = vpop.eup %1657 }
 0x341   :  { %v455_v25 = vmul.f32 %v1658_v24, %v453_v23  ;;  %vm460_vm5 = vweird.f32 %v1658_v24 }
 0x342   :  { %vm461_vm7 = vmor %vm459_vm6, %vm460_vm5 }
 0x343   :  { %v456_v26 = vsub.f32 1.0, %v455_v25 }
 0x345   :  { %v457_v29 = vmul.f32 %v1658_v24, %v456_v26 }
 0x347   :  { %v458_v30 = vadd.f32 %v1658_v24, %v457_v29 }
 0x349   :  { %v462_v34 = vsel %vm461_vm7, %v1658_v24, %v458_v30 }
 0x34a   :  { %v467_v37 = vsel %vm464_vm8, %v466_v35, %v462_v34 }
 0x34c   :  { %v401_v15 = vpop.permute.xlu2 %400 }
 0x34d   :  { %v403_v16 = vmul.f32 %v401_v15, %v398_v12 }
 0x34f   :  { %405 = vrot.lane.b32.xlu0 %v403_v16, %s2003_s21 }
 0x357   :  { %489 = vrot.lane.b32.xlu0 %v445_v49, %s2005_s23  ;;  %v469_v49 = vadd.f32 %v447_v19, %v354_v45 }
 0x359   :  { %v1585_v50 = vmul.f32 -1.442695, %v469_v49 }
 0x3c1   :  { %v406_v27 = vpop.permute.xlu0 %405 }
 0x3c2   :  { %v408_v28 = vadd.f32 %v406_v27, %v352_v53 }
 0x3c4   :  { %1659 = vtanh.f32 %v408_v28 }
 0x3c9   :  { %v490_v36 = vpop.permute.xlu0 %489 }
 0x3ca   :  { %v1660_v31 = vpop.eup %1659  ;;  %v492_v38 = vmul.f32 %v490_v36, %v467_v37 }
 0x3cb   :  { %412 = vrot.lane.b32.xlu2 %v1660_v31, %s2004_s22 }
 0x3d3   :  { %494 = vrot.lane.b32.xlu2 %v492_v38, %s2003_s21 }
 0x425   :  { %v413_v40 = vpop.permute.xlu2 %412 }
 0x426   :  { %v415_v41 = vmul.f32 %v413_v40, %v410_v39  ;;  %v518_v39 = vld [vmem:[#allocation2 + $0x10] sm:$0xc] }
 0x428   :  { %v2209_v42 = vadd.f32 %v418_v14, %v415_v41 }
 0x42a   :  { %v520_v43 = vrot.slane %v2209_v42, 2 }
 0x42c   :  { %521 = vrot.lane.b32.xlu1 %v520_v43, %s2004_s22 }
 0x42d   :  { %v495_v46 = vpop.permute.xlu2 %494 }
 0x42e   :  { %v497_v47 = vadd.f32 %v495_v46, %v354_v45 }
 0x430   :  { %1661 = vtanh.f32 %v497_v47 }
 0x431   :  { %1663 = vpow2.f32 %v1585_v50 }
 0x436   :  { %v1662_v48 = vpop.eup %1661 }
 0x437   :  { %501 = vrot.lane.b32.xlu0 %v1662_v48, %s2004_s22  ;;  %v1664_v51 = vpop.eup %1663 }
 0x438   :  { %v473_v52 = vadd.f32 1.0, %v1664_v51 }
 0x43a   :  { %1665 = vrcp.f32 %v473_v52  ;;  %v485_v59 = vand.u32 2147483648, %v473_v52  ;;  %vm479_vm10 = vweird.f32 %v473_v52  ;;  %v483_v60 = vand.u32 2147483647, %v473_v52 }
 0x43c   :  { %v486_v62 = vor.u32 1.1754944e-38, %v485_v59  ;;  %vm484_vm12 = vcmp.eq.f32.partialorder %v483_v60, 8.507059e+37 }
 0x440   :  { %v1666_v53 = vpop.eup %1665 }
 0x441   :  { %v475_v54 = vmul.f32 %v1666_v53, %v473_v52  ;;  %vm480_vm9 = vweird.f32 %v1666_v53 }
 0x442   :  { %vm481_vm11 = vmor %vm479_vm10, %vm480_vm9 }
 0x443   :  { %v476_v55 = vsub.f32 1.0, %v475_v54 }
 0x445   :  { %v477_v56 = vmul.f32 %v1666_v53, %v476_v55 }
 0x447   :  { %v478_v58 = vadd.f32 %v1666_v53, %v477_v56 }
 0x449   :  { %v482_v61 = vsel %vm481_vm11, %v1666_v53, %v478_v58 }
 0x44a   :  { %v487_v63 = vsel %vm484_vm12, %v486_v62, %v482_v61  ;;  %v519_v62 = vld [vmem:[#allocation2 + $0x18] sm:$0xc] }
 0x44b   :  { %v499_v2 = vsub.f32 1.0, %v487_v63  ;;  %v507_v11 = vmul.f32 %v505_v5, %v487_v63 }
 0x49e   :  { %v522_v57 = vpop.permute.xlu1 %521 }
 0x49f   :  { %1586 = vmatmul.msk.f32.vlgmr.msrb.gmra.mxu0 %vm195_vm15, %v522_v57 }
 0x4a0   :  { %1192 = vmatpush.msrb.mxu0 %v2089_v0 }
 0x4a2   :  { %1193 = vmatpush.msrb.mxu0 %v2095_v3 }
 0x4a4   :  { %1194 = vmatpush.msrb.mxu0 %v2099_v6 }
 0x4a6   :  { %1195 = vmatpush.msrb.mxu0 %v2107_v9 }
 0x4a9   :  { %v502_v8 = vpop.permute.xlu0 %501 }
 0x4aa   :  { %v504_v12 = vmul.f32 %v502_v8, %v499_v2 }
 0x4ac   :  { %v2220_v14 = vadd.f32 %v507_v11, %v504_v12  ;;  %v584_v11 = vrot.slane %v2209_v42, 6 }
 0x4ae   :  { %v589_v15 = vrot.slane %v2220_v14, 4  ;;  %516 = vst.msk [vmem:[#allocation13 + $0x8] sm:$0x30] %vm515_vm13, %v2220_v14 }
 0x4b0   :  { %1588 = vmatmul.msk.f32.vlgmr.msrb.gmra.mxu1 %vm195_vm15, %v589_v15 }
 0x4b1   :  { %1259 = vmatpush.msrb.mxu1 %v2091_v1 }
 0x4b3   :  { %1260 = vmatpush.msrb.mxu1 %v2097_v4 }
 0x4b5   :  { %1261 = vmatpush.msrb.mxu1 %v2101_v7 }
 0x4b7   :  { %1262 = vmatpush.msrb.mxu1 %v2109_v10 }
 0x51c   :  { %v542_v44 = vpop.f32.mrf.mxu0 }
 0x51d   :  { %v543_v16 = vadd.f32 %v2148_v17, %v542_v44 }
 0x51f   :  { %v546_v19 = vrot.slane %v543_v16, 4 }
 0x521   :  { %568 = vrot.lane.b32.xlu1 %v546_v19, %s2003_s21  ;;  %v548_v23 = vadd.f32 %v546_v19, %v517_v22 }
 0x523   :  { %v1587_v24 = vmul.f32 -1.442695, %v548_v23 }
 0x525   :  { %1667 = vpow2.f32 %v1587_v24 }
 0x52b   :  { %v1668_v25 = vpop.eup %1667 }
 0x52c   :  { %v552_v27 = vadd.f32 1.0, %v1668_v25 }
 0x52d   :  { %v609_v20 = vpop.f32.mrf.mxu1 }
 0x52e   :  { %v610_v21 = vadd.f32 %v2153_v18, %v609_v20  ;;  %1669 = vrcp.f32 %v552_v27  ;;  %v564_v32 = vand.u32 2147483648, %v552_v27  ;;  %vm558_vm2 = vweird.f32 %v552_v27 }
 0x52f   :  { %v562_v33 = vand.u32 2147483647, %v552_v27 }
 0x530   :  { %v613_v13 = vrot.slane %v610_v21, 6  ;;  %v565_v35 = vor.u32 1.1754944e-38, %v564_v32 }
 0x531   :  { %vm563_vm4 = vcmp.eq.f32.partialorder %v562_v33, 8.507059e+37 }
 0x532   :  { %657 = vrot.lane.b32.xlu1 %v613_v13, %s2005_s23  ;;  %614 = vrot.lane.b32.xlu0 %v613_v13, %s2004_s22 }
 0x534   :  { %v1670_v26 = vpop.eup %1669 }
 0x535   :  { %v554_v28 = vmul.f32 %v1670_v26, %v552_v27  ;;  %vm559_vm1 = vweird.f32 %v1670_v26 }
 0x536   :  { %vm560_vm3 = vmor %vm558_vm2, %vm559_vm1  ;;  %vm513_vm1 = vcmask 257026  }
 0x537   :  { %v555_v29 = vsub.f32 1.0, %v554_v28 }
 0x539   :  { %v556_v30 = vmul.f32 %v1670_v26, %v555_v29 }
 0x53b   :  { %v557_v31 = vadd.f32 %v1670_v26, %v556_v30 }
 0x53d   :  { %v561_v34 = vsel %vm560_vm3, %v1670_v26, %v557_v31 }
 0x53e   :  { %v566_v37 = vsel %vm563_vm4, %v565_v35, %v561_v34  ;;  %v673_v34 = vrot.slane %v2220_v14, 2 }
 0x53f   :  { %v578_v8 = vsub.f32 1.0, %v566_v37  ;;  %v586_v15 = vmul.f32 %v584_v11, %v566_v37 }
 0x593   :  { %v569_v36 = vpop.permute.xlu1 %568 }
 0x594   :  { %v571_v38 = vmul.f32 %v569_v36, %v566_v37 }
 0x596   :  { %573 = vrot.lane.b32.xlu2 %v571_v38, %s2003_s21 }
 0x5a4   :  { %v615_v40 = vpop.permute.xlu0 %614  ;;  %v658_v56 = vpop.permute.xlu1 %657 }
 0x5a5   :  { %v617_v41 = vadd.f32 %v615_v40, %v518_v39  ;;  %v637_v20 = vadd.f32 %v615_v40, %v519_v62 }
 0x5a7   :  { %v1589_v43 = vmul.f32 -1.442695, %v617_v41  ;;  %v1590_v21 = vmul.f32 -1.442695, %v637_v20 }
 0x5a9   :  { %1671 = vpow2.f32 %v1589_v43 }
 0x5af   :  { %v1672_v45 = vpop.eup %1671 }
 0x5b0   :  { %v621_v46 = vadd.f32 1.0, %v1672_v45 }
 0x5b2   :  { %1673 = vrcp.f32 %v621_v46  ;;  %v633_v50 = vand.u32 2147483648, %v621_v46  ;;  %v631_v52 = vand.u32 2147483647, %v621_v46  ;;  %vm627_vm6 = vweird.f32 %v621_v46 }
 0x5b4   :  { %v634_v54 = vor.u32 1.1754944e-38, %v633_v50  ;;  %vm632_vm8 = vcmp.eq.f32.partialorder %v631_v52, 8.507059e+37 }
 0x5b8   :  { %v1674_v47 = vpop.eup %1673 }
 0x5b9   :  { %v623_v48 = vmul.f32 %v1674_v47, %v621_v46  ;;  %vm628_vm5 = vweird.f32 %v1674_v47 }
 0x5ba   :  { %vm629_vm7 = vmor %vm627_vm6, %vm628_vm5 }
 0x5bb   :  { %v624_v49 = vsub.f32 1.0, %v623_v48 }
 0x5bd   :  { %v625_v51 = vmul.f32 %v1674_v47, %v624_v49 }
 0x5bf   :  { %v626_v53 = vadd.f32 %v1674_v47, %v625_v51 }
 0x5c1   :  { %v630_v55 = vsel %vm629_vm7, %v1674_v47, %v626_v53 }
 0x5c2   :  { %v635_v57 = vsel %vm632_vm8, %v634_v54, %v630_v55 }
 0x5c3   :  { %v660_v58 = vmul.f32 %v658_v56, %v635_v57 }
 0x5c5   :  { %662 = vrot.lane.b32.xlu0 %v660_v58, %s2003_s21 }
 0x5f0   :  { %v574_v59 = vpop.permute.xlu2 %573 }
 0x5f1   :  { %v576_v60 = vadd.f32 %v574_v59, %v517_v22 }
 0x5f3   :  { %1675 = vtanh.f32 %v576_v60 }
 0x5f9   :  { %v1676_v61 = vpop.eup %1675 }
 0x5fa   :  { %580 = vrot.lane.b32.xlu2 %v1676_v61, %s2004_s22 }
 0x637   :  { %v663_v63 = vpop.permute.xlu0 %662 }
 0x638   :  { %v665_v2 = vadd.f32 %v663_v63, %v519_v62 }
 0x63a   :  { %1677 = vtanh.f32 %v665_v2 }
 0x63b   :  { %1679 = vpow2.f32 %v1590_v21 }
 0x640   :  { %v1678_v5 = vpop.eup %1677 }
 0x641   :  { %669 = vrot.lane.b32.xlu2 %v1678_v5, %s2004_s22  ;;  %v1680_v13 = vpop.eup %1679 }
 0x642   :  { %v641_v22 = vadd.f32 1.0, %v1680_v13 }
 0x644   :  { %1681 = vrcp.f32 %v641_v22  ;;  %v653_v28 = vand.u32 2147483648, %v641_v22  ;;  %vm647_vm10 = vweird.f32 %v641_v22  ;;  %v651_v29 = vand.u32 2147483647, %v641_v22 }
 0x646   :  { %v654_v31 = vor.u32 1.1754944e-38, %v653_v28  ;;  %vm652_vm12 = vcmp.eq.f32.partialorder %v651_v29, 8.507059e+37 }
 0x64a   :  { %v1682_v23 = vpop.eup %1681 }
 0x64b   :  { %v643_v24 = vmul.f32 %v1682_v23, %v641_v22  ;;  %vm648_vm9 = vweird.f32 %v1682_v23 }
 0x64c   :  { %vm649_vm11 = vmor %vm647_vm10, %vm648_vm9 }
 0x64d   :  { %v644_v25 = vsub.f32 1.0, %v643_v24  ;;  %v685_v24 = vld [vmem:[#allocation2 + $0x18] sm:$0x3] }
 0x64f   :  { %v645_v27 = vmul.f32 %v1682_v23, %v644_v25 }
 0x651   :  { %v646_v26 = vadd.f32 %v1682_v23, %v645_v27 }
 0x653   :  { %v650_v30 = vsel %vm649_vm11, %v1682_v23, %v646_v26 }
 0x654   :  { %v581_v12 = vpop.permute.xlu2 %580  ;;  %v655_v32 = vsel %vm652_vm12, %v654_v31, %v650_v30 }
 0x655   :  { %v583_v44 = vmul.f32 %v581_v12, %v578_v8  ;;  %v667_v33 = vsub.f32 1.0, %v655_v32  ;;  %v675_v36 = vmul.f32 %v673_v34, %v655_v32 }
 0x657   :  { %v2240_v16 = vadd.f32 %v586_v15, %v583_v44 }
 0x659   :  { %v686_v19 = vrot.slane %v2240_v16, 4 }
 0x65b   :  { %687 = vrot.lane.b32.xlu1 %v686_v19, %s2004_s22 }
 0x69b   :  { %v670_v35 = vpop.permute.xlu2 %669 }
 0x69c   :  { %v672_v37 = vmul.f32 %v670_v35, %v667_v33 }
 0x69e   :  { %v2245_v38 = vadd.f32 %v675_v36, %v672_v37 }
 0x6a0   :  { %v755_v39 = vrot.slane %v2245_v38, 2  ;;  %682 = vst.msk [vmem:[#allocation13 + $0x8] sm:$0xc] %vm513_vm1, %v2245_v38 }
 0x6a2   :  { %1593 = vmatmul.msk.f32.vlgmr.msra.gmra.mxu3 %vm195_vm15, %v755_v39 }
 0x6a3   :  { %1425 = vmatpush.msra.mxu3 %v2091_v1 }
 0x6a5   :  { %1426 = vmatpush.msra.mxu3 %v2097_v4 }
 0x6a7   :  { %1427 = vmatpush.msra.mxu3 %v2101_v7 }
 0x6a9   :  { %1428 = vmatpush.msra.mxu3 %v2109_v10 }
 0x6cd   :  { %v688_v14 = vpop.permute.xlu1 %687 }
 0x6ce   :  { %1591 = vmatmul.msk.f32.vlgmr.msra.gmra.mxu2 %vm195_vm15, %v688_v14 }
 0x6cf   :  { %1358 = vmatpush.msra.mxu2 %v2089_v0  ;;  %v683_v0 = vld [vmem:[#allocation2] sm:$0xc0] }
 0x6d1   :  { %1359 = vmatpush.msra.mxu2 %v2095_v3 }
 0x6d3   :  { %1360 = vmatpush.msra.mxu2 %v2099_v6  ;;  %v684_v6 = vld [vmem:[#allocation2 + $0x10] sm:$0x3] }
 0x6d5   :  { %1361 = vmatpush.msra.mxu2 %v2107_v9 }
 0x725   :  { %v775_v40 = vpop.f32.mrf.mxu3 }
 0x726   :  { %v776_v1 = vadd.f32 %v2153_v18, %v775_v40  ;;  %v750_v40 = vrot.slane %v2240_v16, 6 }
 0x728   :  { %779 = vrot.lane.b32.xlu2 %v776_v1, %s2004_s22 }
 0x751   :  { %v708_v4 = vpop.f32.mrf.mxu2 }
 0x752   :  { %v709_v7 = vadd.f32 %v2148_v17, %v708_v4 }
 0x754   :  { %v712_v10 = vrot.slane %v709_v7, 2 }
 0x756   :  { %734 = vrot.lane.b32.xlu0 %v712_v10, %s2003_s21  ;;  %v714_v41 = vadd.f32 %v712_v10, %v683_v0 }
 0x758   :  { %v1592_v3 = vmul.f32 -1.442695, %v714_v41 }
 0x75a   :  { %1683 = vpow2.f32 %v1592_v3 }
 0x75e   :  { %822 = vrot.lane.b32.xlu0 %v776_v1, %s2005_s23 }
 0x760   :  { %v1684_v46 = vpop.eup %1683 }
 0x761   :  { %v718_v47 = vadd.f32 1.0, %v1684_v46 }
 0x763   :  { %v730_v58 = vand.u32 2147483648, %v718_v47  ;;  %vm724_vm3 = vweird.f32 %v718_v47  ;;  %v728_v59 = vand.u32 2147483647, %v718_v47 }
 0x765   :  { %v731_v62 = vor.u32 1.1754944e-38, %v730_v58  ;;  %vm729_vm5 = vcmp.eq.f32.partialorder %v728_v59, 8.507059e+37 }
 0x782   :  { %v780_v43 = vpop.permute.xlu2 %779 }
 0x783   :  { %v782_v9 = vadd.f32 %v780_v43, %v684_v6  ;;  %v802_v28 = vadd.f32 %v780_v43, %v685_v24 }
 0x785   :  { %v1594_v45 = vmul.f32 -1.442695, %v782_v9  ;;  %v1595_v29 = vmul.f32 -1.442695, %v802_v28 }
 0x787   :  { %1685 = vpow2.f32 %v1594_v45 }
 0x788   :  { %1687 = vrcp.f32 %v718_v47 }
 0x78d   :  { %v1686_v48 = vpop.eup %1685 }
 0x78e   :  { %v786_v49 = vadd.f32 1.0, %v1686_v48  ;;  %v1688_v50 = vpop.eup %1687 }
 0x78f   :  { %v720_v51 = vmul.f32 %v1688_v50, %v718_v47  ;;  %vm725_vm2 = vweird.f32 %v1688_v50 }
 0x790   :  { %1689 = vrcp.f32 %v786_v49  ;;  %vm726_vm4 = vmor %vm724_vm3, %vm725_vm2  ;;  %v798_v11 = vand.u32 2147483648, %v786_v49  ;;  %vm792_vm7 = vweird.f32 %v786_v49  ;;  %v796_v12 = vand.u32 2147483647, %v786_v49 }
 0x791   :  { %v721_v52 = vsub.f32 1.0, %v720_v51 }
 0x792   :  { %v799_v44 = vor.u32 1.1754944e-38, %v798_v11  ;;  %vm797_vm9 = vcmp.eq.f32.partialorder %v796_v12, 8.507059e+37 }
 0x793   :  { %v722_v54 = vmul.f32 %v1688_v50, %v721_v52 }
 0x795   :  { %v723_v56 = vadd.f32 %v1688_v50, %v722_v54 }
 0x796   :  { %v1690_v53 = vpop.eup %1689 }
 0x797   :  { %v788_v55 = vmul.f32 %v1690_v53, %v786_v49  ;;  %v727_v60 = vsel %vm726_vm4, %v1688_v50, %v723_v56  ;;  %vm793_vm6 = vweird.f32 %v1690_v53 }
 0x798   :  { %v732_v2 = vsel %vm729_vm5, %v731_v62, %v727_v60  ;;  %vm794_vm8 = vmor %vm792_vm7, %vm793_vm6 }
 0x799   :  { %v789_v57 = vsub.f32 1.0, %v788_v55  ;;  %v744_v14 = vsub.f32 1.0, %v732_v2  ;;  %v752_v7 = vmul.f32 %v750_v40, %v732_v2 }
 0x79b   :  { %v790_v61 = vmul.f32 %v1690_v53, %v789_v57  ;;  %v848_v57 = vld [vmem:[#allocation2] sm:$0xc0] }
 0x79d   :  { %v791_v8 = vadd.f32 %v1690_v53, %v790_v61 }
 0x79f   :  { %v795_v15 = vsel %vm794_vm8, %v1690_v53, %v791_v8  ;;  %v847_v53 = vld [vmem:[#allocation2 + $0x10] sm:$0x3] }
 0x7a0   :  { %v800_v20 = vsel %vm797_vm9, %v799_v44, %v795_v15 }
 0x7c8   :  { %v735_v63 = vpop.permute.xlu0 %734 }
 0x7c9   :  { %v737_v5 = vmul.f32 %v735_v63, %v732_v2 }
 0x7cb   :  { %739 = vrot.lane.b32.xlu1 %v737_v5, %s2003_s21 }
 0x7d0   :  { %v823_v19 = vpop.permute.xlu0 %822 }
 0x7d1   :  { %v825_v21 = vmul.f32 %v823_v19, %v800_v20 }
 0x7d3   :  { %827 = vrot.lane.b32.xlu2 %v825_v21, %s2003_s21 }
 0x82d   :  { %v828_v23 = vpop.permute.xlu2 %827 }
 0x82e   :  { %v830_v25 = vadd.f32 %v828_v23, %v685_v24 }
 0x83d   :  { %v740_v13 = vpop.permute.xlu1 %739 }
 0x83e   :  { %v742_v22 = vadd.f32 %v740_v13, %v683_v0 }
 0x840   :  { %1691 = vtanh.f32 %v742_v22 }
 0x841   :  { %1693 = vtanh.f32 %v830_v25 }
 0x842   :  { %1695 = vpow2.f32 %v1595_v29 }
 0x846   :  { %v1692_v27 = vpop.eup %1691 }
 0x847   :  { %746 = vrot.lane.b32.xlu1 %v1692_v27, %s2004_s22  ;;  %v1694_v26 = vpop.eup %1693 }
 0x848   :  { %v1696_v30 = vpop.eup %1695 }
 0x849   :  { %v806_v31 = vadd.f32 1.0, %v1696_v30 }
 0x84b   :  { %1697 = vrcp.f32 %v806_v31  ;;  %v818_v37 = vand.u32 2147483648, %v806_v31  ;;  %vm812_vm11 = vweird.f32 %v806_v31  ;;  %v816_v1 = vand.u32 2147483647, %v806_v31 }
 0x84d   :  { %v819_v41 = vor.u32 1.1754944e-38, %v818_v37  ;;  %vm817_vm2 = vcmp.eq.f32.partialorder %v816_v1, 8.507059e+37 }
 0x84f   :  { %834 = vrot.lane.b32.xlu1 %v1694_v26, %s2004_s22 }
 0x851   :  { %v1698_v32 = vpop.eup %1697 }
 0x852   :  { %v808_v33 = vmul.f32 %v1698_v32, %v806_v31  ;;  %vm813_vm10 = vweird.f32 %v1698_v32 }
 0x853   :  { %vm814_vm12 = vmor %vm812_vm11, %vm813_vm10 }
 0x854   :  { %v809_v34 = vsub.f32 1.0, %v808_v33 }
 0x856   :  { %v810_v35 = vmul.f32 %v1698_v32, %v809_v34 }
 0x858   :  { %v811_v36 = vadd.f32 %v1698_v32, %v810_v35  ;;  %v849_v35 = vld [vmem:[#allocation2 + $0x8] sm:$0xc0] }
 0x85a   :  { %v815_v0 = vsel %vm814_vm12, %v1698_v32, %v811_v36 }
 0x85b   :  { %v820_v43 = vsel %vm817_vm2, %v819_v41, %v815_v0 }
 0x85c   :  { %v832_v9 = vsub.f32 1.0, %v820_v43  ;;  %v839_v46 = vmul.f32 %v820_v43, %v755_v39 }
 0x8b9   :  { %v747_v4 = vpop.permute.xlu1 %746 }
 0x8ba   :  { %v749_v10 = vmul.f32 %v747_v4, %v744_v14 }
 0x8bc   :  { %v2272_v3 = vadd.f32 %v752_v7, %v749_v10 }
 0x8be   :  { %v850_v6 = vrot.slane %v2272_v3, 6 }
 0x8c0   :  { %851 = vrot.lane.b32.xlu0 %v850_v6, %s2004_s22 }
 0x8c1   :  { %v835_v45 = vpop.permute.xlu1 %834 }
 0x8c2   :  { %v837_v47 = vmul.f32 %v835_v45, %v832_v9 }
 0x8c4   :  { %v2280_v48 = vadd.f32 %v839_v46, %v837_v47 }
 0x8c6   :  { %846 = vst.msk [vmem:[#allocation13 + $0x8] sm:$0x3] %vm348_vm0, %v2280_v48  ;;  %1598 = vmatmul.msk.f32.vlgmr.msra.gmra.mxu1 %vm195_vm15, %v2280_v48 }
 0x932   :  { %v852_v49 = vpop.permute.xlu0 %851 }
 0x933   :  { %1596 = vmatmul.msk.f32.vlgmr.msra.gmra.mxu0 %vm195_vm15, %v852_v49 }
 0x943   :  { %v935_v50 = vpop.f32.mrf.mxu1 }
 0x944   :  { %v936_v51 = vadd.f32 %v2153_v18, %v935_v50 }
 0x946   :  { %v939_v52 = vrot.slane %v936_v51, 2 }
 0x948   :  { %940 = vrot.lane.b32.xlu0 %v939_v52, %s2004_s22 }
 0x9b0   :  { %v872_v38 = vpop.f32.mrf.mxu0 }
 0x9b1   :  { %v873_v39 = vadd.f32 %v2148_v17, %v872_v38 }
 0x9b3   :  { %896 = vrot.lane.b32.xlu2 %v873_v39, %s2003_s21  ;;  %v875_v54 = vadd.f32 %v873_v39, %v847_v53 }
 0x9b5   :  { %v1597_v55 = vmul.f32 -1.442695, %v875_v54 }
 0x9b7   :  { %1699 = vpow2.f32 %v1597_v55 }
 0x9ba   :  { %v941_v56 = vpop.permute.xlu0 %940 }
 0x9bb   :  { %983 = vrot.lane.b32.xlu2 %v939_v52, %s2005_s23  ;;  %v943_v58 = vadd.f32 %v941_v56, %v848_v57  ;;  %v963_v1 = vadd.f32 %v941_v56, %v849_v35  ;;  %v999_v56 = vrot.slane %v2280_v48, 2  ;;  %v2314_v48 = vld [vmem:[%s2432_s6] ss:$0 sm:$0xff] }
 0x9bd   :  { %v1599_v59 = vmul.f32 -1.442695, %v943_v58  ;;  %v1700_v60 = vpop.eup %1699  ;;  %v1600_v4 = vmul.f32 -1.442695, %v963_v1 }
 0x9be   :  { %v879_v18 = vadd.f32 1.0, %v1700_v60 }
 0x9bf   :  { %1701 = vpow2.f32 %v1599_v59 }
 0x9c0   :  { %1703 = vrcp.f32 %v879_v18  ;;  %v891_v44 = vand.u32 2147483648, %v879_v18  ;;  %vm885_vm4 = vweird.f32 %v879_v18  ;;  %v889_v19 = vand.u32 2147483647, %v879_v18 }
 0x9c2   :  { %v892_v13 = vor.u32 1.1754944e-38, %v891_v44  ;;  %vm890_vm6 = vcmp.eq.f32.partialorder %v889_v19, 8.507059e+37  ;;  %v1010_v19 = vld [vmem:[#allocation2] sm:$0x30] }
 0x9c5   :  { %v1702_v61 = vpop.eup %1701 }
 0x9c6   :  { %v947_v62 = vadd.f32 1.0, %v1702_v61  ;;  %v1704_v63 = vpop.eup %1703 }
 0x9c7   :  { %v881_v17 = vmul.f32 %v1704_v63, %v879_v18  ;;  %vm886_vm3 = vweird.f32 %v1704_v63 }
 0x9c8   :  { %1705 = vrcp.f32 %v947_v62  ;;  %vm887_vm5 = vmor %vm885_vm4, %vm886_vm3  ;;  %v959_v27 = vand.u32 2147483648, %v947_v62  ;;  %vm953_vm8 = vweird.f32 %v947_v62  ;;  %v957_v26 = vand.u32 2147483647, %v947_v62 }
 0x9c9   :  { %v882_v2 = vsub.f32 1.0, %v881_v17 }
 0x9ca   :  { %v960_v29 = vor.u32 1.1754944e-38, %v959_v27  ;;  %vm958_vm10 = vcmp.eq.f32.partialorder %v957_v26, 8.507059e+37 }
 0x9cb   :  { %v883_v8 = vmul.f32 %v1704_v63, %v882_v2  ;;  %v2321_v2 = vld [vmem:[%s2430_s4] ss:$0 sm:$0xff] }
 0x9cd   :  { %v884_v12 = vadd.f32 %v1704_v63, %v883_v8 }
 0x9ce   :  { %v1706_v5 = vpop.eup %1705 }
 0x9cf   :  { %v949_v11 = vmul.f32 %v1706_v5, %v947_v62  ;;  %v888_v20 = vsel %vm887_vm5, %v1704_v63, %v884_v12  ;;  %vm954_vm7 = vweird.f32 %v1706_v5 }
 0x9d0   :  { %v893_v22 = vsel %vm890_vm6, %v892_v13, %v888_v20  ;;  %vm955_vm9 = vmor %vm953_vm8, %vm954_vm7 }
 0x9d1   :  { %v950_v15 = vsub.f32 1.0, %v949_v11  ;;  %v906_v47 = vsub.f32 1.0, %v893_v22  ;;  %v913_v51 = vmul.f32 %v893_v22, %v850_v6  ;;  %v1009_v11 = vld [vmem:[#allocation2 + $0x10] sm:$0xc] }
 0x9d3   :  { %v951_v21 = vmul.f32 %v1706_v5, %v950_v15 }
 0x9d5   :  { %v952_v25 = vadd.f32 %v1706_v5, %v951_v21 }
 0x9d7   :  { %v956_v28 = vsel %vm955_vm9, %v1706_v5, %v952_v25 }
 0x9d8   :  { %v961_v30 = vsel %vm958_vm10, %v960_v29, %v956_v28 }
 0xa0d   :  { %v897_v23 = vpop.permute.xlu2 %896 }
 0xa0e   :  { %v899_v24 = vmul.f32 %v897_v23, %v893_v22 }
 0xa10   :  { %901 = vrot.lane.b32.xlu1 %v899_v24, %s2003_s21 }
 0xa15   :  { %v984_v31 = vpop.permute.xlu2 %983 }
 0xa16   :  { %v986_v32 = vmul.f32 %v984_v31, %v961_v30 }
 0xa18   :  { %988 = vrot.lane.b32.xlu1 %v986_v32, %s2003_s21 }
 0xa82   :  { %v902_v33 = vpop.permute.xlu1 %901 }
 0xa83   :  { %v904_v34 = vadd.f32 %v902_v33, %v847_v53 }
 0xa85   :  { %1707 = vtanh.f32 %v904_v34 }
 0xa8a   :  { %v989_v36 = vpop.permute.xlu1 %988 }
 0xa8b   :  { %v1708_v37 = vpop.eup %1707  ;;  %v991_v14 = vadd.f32 %v989_v36, %v849_v35 }
 0xa8c   :  { %908 = vrot.lane.b32.xlu0 %v1708_v37, %s2004_s22 }
 0xa8d   :  { %1709 = vtanh.f32 %v991_v14 }
 0xa8e   :  { %1711 = vpow2.f32 %v1600_v4 }
 0xa93   :  { %v1710_v40 = vpop.eup %1709 }
 0xa94   :  { %995 = vrot.lane.b32.xlu0 %v1710_v40, %s2004_s22  ;;  %v1712_v7 = vpop.eup %1711 }
 0xa95   :  { %v967_v10 = vadd.f32 1.0, %v1712_v7 }
 0xa97   :  { %1713 = vrcp.f32 %v967_v10  ;;  %v979_v46 = vand.u32 2147483648, %v967_v10  ;;  %vm973_vm12 = vweird.f32 %v967_v10  ;;  %v977_v49 = vand.u32 2147483647, %v967_v10 }
 0xa99   :  { %v980_v39 = vor.u32 1.1754944e-38, %v979_v46  ;;  %vm978_vm3 = vcmp.eq.f32.partialorder %v977_v49, 8.507059e+37  ;;  %v1011_v49 = vld [vmem:[#allocation2 + $0x8] sm:$0x30] }
 0xa9d   :  { %v1714_v0 = vpop.eup %1713 }
 0xa9e   :  { %v969_v41 = vmul.f32 %v1714_v0, %v967_v10  ;;  %vm974_vm11 = vweird.f32 %v1714_v0 }
 0xa9f   :  { %vm975_vm2 = vmor %vm973_vm12, %vm974_vm11 }
 0xaa0   :  { %v970_v43 = vsub.f32 1.0, %v969_v41 }
 0xaa2   :  { %v971_v9 = vmul.f32 %v1714_v0, %v970_v43 }
 0xaa4   :  { %v972_v45 = vadd.f32 %v1714_v0, %v971_v9 }
 0xaa6   :  { %v976_v38 = vsel %vm975_vm2, %v1714_v0, %v972_v45 }
 0xaa7   :  { %v981_v54 = vsel %vm978_vm3, %v980_v39, %v976_v38 }
 0xaa8   :  { %v993_v55 = vsub.f32 1.0, %v981_v54  ;;  %v1001_v58 = vmul.f32 %v999_v56, %v981_v54 }
 0xafe   :  { %v909_v50 = vpop.permute.xlu0 %908 }
 0xaff   :  { %v911_v52 = vmul.f32 %v909_v50, %v906_v47 }
 0xb01   :  { %v2298_v53 = vadd.f32 %v913_v51, %v911_v52 }
 0xb03   :  { %1004 = vrot.lane.b32.xlu2 %v2298_v53, %s2004_s22 }
 0xb06   :  { %v996_v57 = vpop.permute.xlu0 %995 }
 0xb07   :  { %v998_v59 = vmul.f32 %v996_v57, %v993_v55 }
 0xb09   :  { %v2303_v60 = vadd.f32 %v1001_v58, %v998_v59 }
 0xb0b   :  { %1008 = vst.msk [vmem:[#allocation13] sm:$0xc0] %vm350_vm14, %v2303_v60  ;;  %v1078_v6 = vrot.slane %v2303_v60, 6 }
 0xb0d   :  { %1603 = vmatmul.msk.f32.vlgmr.msrb.gmra.mxu3 %vm195_vm15, %v1078_v6 }
 0xb5d   :  { %v1005_v18 = vpop.permute.xlu2 %1004 }
 0xb5e   :  { %1007 = vst.msk [vmem:[#allocation12 + $0x8] sm:$0x3] %vm348_vm0, %v1005_v18  ;;  %1601 = vmatmul.msk.f32.vlgmr.msrb.gmra.mxu2 %vm195_vm15, %v1005_v18 }
 0xb90   :  { %v1098_v61 = vpop.f32.mrf.mxu3 }
 0xb91   :  { %v1099_v62 = vadd.f32 %v2314_v48, %v1098_v61 }
 0xb93   :  { %v1102_v63 = vrot.slane %v1099_v62, 4  ;;  %v1073_v62 = vrot.slane %v2298_v53, 6  ;;  %v1162_v53 = vrot.slane %v2303_v60, 2 }
 0xb95   :  { %1103 = vrot.lane.b32.xlu2 %v1102_v63, %s2004_s22 }
 0xbe1   :  { %v1031_v17 = vpop.f32.mrf.mxu2 }
 0xbe2   :  { %v1032_v5 = vadd.f32 %v2321_v2, %v1031_v17 }
 0xbe4   :  { %v1035_v8 = vrot.slane %v1032_v5, 6 }
 0xbe6   :  { %1057 = vrot.lane.b32.xlu1 %v1035_v8, %s2003_s21  ;;  %v1037_v12 = vadd.f32 %v1035_v8, %v1009_v11 }
 0xbe8   :  { %v1602_v15 = vmul.f32 -1.442695, %v1037_v12 }
 0xbea   :  { %1715 = vpow2.f32 %v1602_v15 }
 0xbee   :  { %1146 = vrot.lane.b32.xlu1 %v1102_v63, %s2005_s23 }
 0xbef   :  { %v1104_v44 = vpop.permute.xlu2 %1103 }
 0xbf0   :  { %v1106_v20 = vadd.f32 %v1104_v44, %v1010_v19  ;;  %v1716_v13 = vpop.eup %1715  ;;  %v1126_v39 = vadd.f32 %v1104_v44, %v1011_v49 }
 0xbf1   :  { %v1041_v22 = vadd.f32 1.0, %v1716_v13 }
 0xbf2   :  { %v1604_v21 = vmul.f32 -1.442695, %v1106_v20  ;;  %v1605_v54 = vmul.f32 -1.442695, %v1126_v39 }
 0xbf3   :  { %v1053_v33 = vand.u32 2147483648, %v1041_v22  ;;  %vm1047_vm5 = vweird.f32 %v1041_v22  ;;  %v1051_v34 = vand.u32 2147483647, %v1041_v22 }
 0xbf4   :  { %1717 = vpow2.f32 %v1604_v21 }
 0xbf5   :  { %1719 = vrcp.f32 %v1041_v22  ;;  %v1054_v37 = vor.u32 1.1754944e-38, %v1053_v33  ;;  %vm1052_vm7 = vcmp.eq.f32.partialorder %v1051_v34, 8.507059e+37 }
 0xbfa   :  { %v1718_v23 = vpop.eup %1717 }
 0xbfb   :  { %v1110_v24 = vadd.f32 1.0, %v1718_v23  ;;  %v1720_v25 = vpop.eup %1719 }
 0xbfc   :  { %v1043_v27 = vmul.f32 %v1720_v25, %v1041_v22  ;;  %vm1048_vm4 = vweird.f32 %v1720_v25 }
 0xbfd   :  { %1721 = vrcp.f32 %v1110_v24  ;;  %vm1049_vm6 = vmor %vm1047_vm5, %vm1048_vm4  ;;  %v1122_v7 = vand.u32 2147483648, %v1110_v24  ;;  %vm1116_vm9 = vweird.f32 %v1110_v24  ;;  %v1120_v10 = vand.u32 2147483647, %v1110_v24 }
 0xbfe   :  { %v1044_v26 = vsub.f32 1.0, %v1043_v27 }
 0xbff   :  { %v1123_v41 = vor.u32 1.1754944e-38, %v1122_v7  ;;  %vm1121_vm11 = vcmp.eq.f32.partialorder %v1120_v10, 8.507059e+37 }
 0xc00   :  { %v1045_v29 = vmul.f32 %v1720_v25, %v1044_v26 }
 0xc02   :  { %v1046_v31 = vadd.f32 %v1720_v25, %v1045_v29 }
 0xc03   :  { %v1722_v28 = vpop.eup %1721 }
 0xc04   :  { %v1112_v30 = vmul.f32 %v1722_v28, %v1110_v24  ;;  %v1050_v35 = vsel %vm1049_vm6, %v1720_v25, %v1046_v31  ;;  %vm1117_vm8 = vweird.f32 %v1722_v28 }
 0xc05   :  { %v1055_v40 = vsel %vm1052_vm7, %v1054_v37, %v1050_v35  ;;  %vm1118_vm10 = vmor %vm1116_vm9, %vm1117_vm8 }
 0xc06   :  { %v1113_v32 = vsub.f32 1.0, %v1112_v30  ;;  %v1067_v63 = vsub.f32 1.0, %v1055_v40  ;;  %v1075_v8 = vmul.f32 %v1073_v62, %v1055_v40 }
 0xc08   :  { %v1114_v36 = vmul.f32 %v1722_v28, %v1113_v32  ;;  %v1172_v32 = vld [vmem:[#allocation2 + $0x10] sm:$0x30] }
 0xc0a   :  { %v1115_v4 = vadd.f32 %v1722_v28, %v1114_v36  ;;  %v1173_v36 = vld [vmem:[#allocation2] sm:$0xc] }
 0xc0c   :  { %v1119_v0 = vsel %vm1118_vm10, %v1722_v28, %v1115_v4 }
 0xc0d   :  { %v1124_v9 = vsel %vm1121_vm11, %v1123_v41, %v1119_v0 }
 0xc58   :  { %v1058_v14 = vpop.permute.xlu1 %1057 }
 0xc59   :  { %v1060_v1 = vmul.f32 %v1058_v14, %v1055_v40 }
 0xc5b   :  { %1062 = vrot.lane.b32.xlu0 %v1060_v1, %s2003_s21 }
 0xc60   :  { %v1147_v43 = vpop.permute.xlu1 %1146 }
 0xc61   :  { %v1149_v45 = vmul.f32 %v1147_v43, %v1124_v9 }
 0xc63   :  { %1151 = vrot.lane.b32.xlu0 %v1149_v45, %s2003_s21 }
 0xccd   :  { %v1063_v46 = vpop.permute.xlu0 %1062 }
 0xcce   :  { %v1065_v47 = vadd.f32 %v1063_v46, %v1009_v11 }
 0xcd0   :  { %1723 = vtanh.f32 %v1065_v47 }
 0xcd5   :  { %v1152_v50 = vpop.permute.xlu0 %1151 }
 0xcd6   :  { %v1724_v51 = vpop.eup %1723  ;;  %v1154_v52 = vadd.f32 %v1152_v50, %v1011_v49 }
 0xcd7   :  { %1069 = vrot.lane.b32.xlu2 %v1724_v51, %s2004_s22 }
 0xcd8   :  { %1725 = vtanh.f32 %v1154_v52 }
 0xcd9   :  { %1727 = vpow2.f32 %v1605_v54 }
 0xcde   :  { %v1726_v38 = vpop.eup %1725 }
 0xcdf   :  { %1158 = vrot.lane.b32.xlu2 %v1726_v38, %s2004_s22  ;;  %v1728_v55 = vpop.eup %1727 }
 0xce0   :  { %v1130_v56 = vadd.f32 1.0, %v1728_v55 }
 0xce2   :  { %1729 = vrcp.f32 %v1130_v56  ;;  %v1142_v61 = vand.u32 2147483648, %v1130_v56  ;;  %vm1136_vm2 = vweird.f32 %v1130_v56  ;;  %v1140_v17 = vand.u32 2147483647, %v1130_v56 }
 0xce4   :  { %v1143_v15 = vor.u32 1.1754944e-38, %v1142_v61  ;;  %vm1141_vm4 = vcmp.eq.f32.partialorder %v1140_v17, 8.507059e+37 }
 0xce8   :  { %v1730_v57 = vpop.eup %1729 }
 0xce9   :  { %v1132_v58 = vmul.f32 %v1730_v57, %v1130_v56  ;;  %vm1137_vm12 = vweird.f32 %v1730_v57 }
 0xcea   :  { %vm1138_vm3 = vmor %vm1136_vm2, %vm1137_vm12 }
 0xceb   :  { %v1133_v59 = vsub.f32 1.0, %v1132_v58 }
 0xced   :  { %v1134_v6 = vmul.f32 %v1730_v57, %v1133_v59 }
 0xcef   :  { %v1135_v18 = vadd.f32 %v1730_v57, %v1134_v6 }
 0xcf1   :  { %v1139_v12 = vsel %vm1138_vm3, %v1730_v57, %v1135_v18 }
 0xcf2   :  { %v1144_v19 = vsel %vm1141_vm4, %v1143_v15, %v1139_v12 }
 0xcf3   :  { %v1156_v21 = vsub.f32 1.0, %v1144_v19  ;;  %v1164_v22 = vmul.f32 %v1162_v53, %v1144_v19 }
 0xd31   :  { %v1070_v5 = vpop.permute.xlu2 %1069 }
 0xd32   :  { %v1072_v11 = vmul.f32 %v1070_v5, %v1067_v63  ;;  %v1174_v5 = vld [vmem:[#allocation2 + $0x8] sm:$0xc] }
 0xd34   :  { %v2331_v44 = vadd.f32 %v1075_v8, %v1072_v11 }
 0xd36   :  { %v1175_v20 = vrot.slane %v2331_v44, 2 }
 0xd38   :  { %1176 = vrot.lane.b32.xlu1 %v1175_v20, %s2004_s22 }
 0xd39   :  { %v1159_v13 = vpop.permute.xlu2 %1158 }
 0xd3a   :  { %v1161_v23 = vmul.f32 %v1159_v13, %v1156_v21 }
 0xd3c   :  { %v2336_v24 = vadd.f32 %v1164_v22, %v1161_v23 }
 0xd3e   :  { %v1244_v25 = vrot.slane %v2336_v24, 4  ;;  %1171 = vst.msk [vmem:[#allocation13] sm:$0x30] %vm515_vm13, %v2336_v24 }
 0xd40   :  { %1608 = vmatmul.msk.f32.vlgmr.msrb.gmra.mxu1 %vm195_vm15, %v1244_v25 }
 0xdaa   :  { %v1177_v27 = vpop.permute.xlu1 %1176 }
 0xdab   :  { %1606 = vmatmul.msk.f32.vlgmr.msrb.gmra.mxu0 %vm195_vm15, %v1177_v27 }
 0xdbd   :  { %v1264_v26 = vpop.f32.mrf.mxu1 }
 0xdbe   :  { %v1265_v28 = vadd.f32 %v2314_v48, %v1264_v26 }
 0xdc0   :  { %v1268_v29 = vrot.slane %v1265_v28, 6 }
 0xdc2   :  { %1269 = vrot.lane.b32.xlu1 %v1268_v29, %s2004_s22 }
 0xe28   :  { %v1197_v60 = vpop.f32.mrf.mxu0 }
 0xe29   :  { %v1198_v30 = vadd.f32 %v2321_v2, %v1197_v60 }
 0xe2b   :  { %v1201_v31 = vrot.slane %v1198_v30, 4 }
 0xe2d   :  { %1223 = vrot.lane.b32.xlu0 %v1201_v31, %s2003_s21  ;;  %v1203_v33 = vadd.f32 %v1201_v31, %v1172_v32 }
 0xe2f   :  { %v1607_v34 = vmul.f32 -1.442695, %v1203_v33 }
 0xe31   :  { %1731 = vpow2.f32 %v1607_v34 }
 0xe34   :  { %v1270_v35 = vpop.permute.xlu1 %1269 }
 0xe35   :  { %1312 = vrot.lane.b32.xlu0 %v1268_v29, %s2005_s23  ;;  %v1272_v37 = vadd.f32 %v1270_v35, %v1173_v36  ;;  %v1292_v19 = vadd.f32 %v1270_v35, %v1174_v5  ;;  %v1239_v29 = vrot.slane %v2331_v44, 6 }
 0xe37   :  { %v1609_v14 = vmul.f32 -1.442695, %v1272_v37  ;;  %v1732_v40 = vpop.eup %1731  ;;  %v1610_v20 = vmul.f32 -1.442695, %v1292_v19 }
 0xe38   :  { %v1207_v1 = vadd.f32 1.0, %v1732_v40  ;;  %v1328_v40 = vrot.slane %v2336_v24, 2 }
 0xe39   :  { %1733 = vpow2.f32 %v1609_v14 }
 0xe3a   :  { %1735 = vrcp.f32 %v1207_v1  ;;  %v1219_v49 = vand.u32 2147483648, %v1207_v1  ;;  %vm1213_vm6 = vweird.f32 %v1207_v1  ;;  %v1217_v50 = vand.u32 2147483647, %v1207_v1 }
 0xe3c   :  { %v1220_v38 = vor.u32 1.1754944e-38, %v1219_v49  ;;  %vm1218_vm8 = vcmp.eq.f32.partialorder %v1217_v50, 8.507059e+37 }
 0xe3f   :  { %v1734_v4 = vpop.eup %1733 }
 0xe40   :  { %v1276_v7 = vadd.f32 1.0, %v1734_v4  ;;  %v1736_v10 = vpop.eup %1735 }
 0xe41   :  { %v1209_v0 = vmul.f32 %v1736_v10, %v1207_v1  ;;  %vm1214_vm5 = vweird.f32 %v1736_v10 }
 0xe42   :  { %1737 = vrcp.f32 %v1276_v7  ;;  %vm1215_vm7 = vmor %vm1213_vm6, %vm1214_vm5  ;;  %v1288_v57 = vand.u32 2147483648, %v1276_v7  ;;  %vm1282_vm10 = vweird.f32 %v1276_v7  ;;  %v1286_v58 = vand.u32 2147483647, %v1276_v7 }
 0xe43   :  { %v1210_v41 = vsub.f32 1.0, %v1209_v0 }
 0xe44   :  { %v1289_v6 = vor.u32 1.1754944e-38, %v1288_v57  ;;  %vm1287_vm12 = vcmp.eq.f32.partialorder %v1286_v58, 8.507059e+37 }
 0xe45   :  { %v1211_v9 = vmul.f32 %v1736_v10, %v1210_v41 }
 0xe47   :  { %v1212_v46 = vadd.f32 %v1736_v10, %v1211_v9 }
 0xe48   :  { %v1738_v43 = vpop.eup %1737 }
 0xe49   :  { %v1278_v45 = vmul.f32 %v1738_v43, %v1276_v7  ;;  %v1216_v51 = vsel %vm1215_vm7, %v1736_v10, %v1212_v46  ;;  %vm1283_vm9 = vweird.f32 %v1738_v43 }
 0xe4a   :  { %v1221_v54 = vsel %vm1218_vm8, %v1220_v38, %v1216_v51  ;;  %vm1284_vm11 = vmor %vm1282_vm10, %vm1283_vm9 }
 0xe4b   :  { %v1279_v47 = vsub.f32 1.0, %v1278_v45  ;;  %v1233_v28 = vsub.f32 1.0, %v1221_v54  ;;  %v1241_v31 = vmul.f32 %v1239_v29, %v1221_v54 }
 0xe4d   :  { %v1280_v52 = vmul.f32 %v1738_v43, %v1279_v47  ;;  %v1339_v47 = vld [vmem:[#allocation2] sm:$0x3] }
 0xe4f   :  { %v1281_v56 = vadd.f32 %v1738_v43, %v1280_v52 }
 0xe51   :  { %v1285_v59 = vsel %vm1284_vm11, %v1738_v43, %v1281_v56 }
 0xe52   :  { %v1290_v61 = vsel %vm1287_vm12, %v1289_v6, %v1285_v59 }
 0xe9f   :  { %v1224_v39 = vpop.permute.xlu0 %1223 }
 0xea0   :  { %v1226_v55 = vmul.f32 %v1224_v39, %v1221_v54 }
 0xea2   :  { %1228 = vrot.lane.b32.xlu2 %v1226_v55, %s2003_s21 }
 0xea7   :  { %v1313_v18 = vpop.permute.xlu0 %1312 }
 0xea8   :  { %v1315_v62 = vmul.f32 %v1313_v18, %v1290_v61 }
 0xeaa   :  { %1317 = vrot.lane.b32.xlu2 %v1315_v62, %s2003_s21  ;;  %v1338_v62 = vld [vmem:[#allocation2 + $0x10] sm:$0xc0] }
 0xefc   :  { %v1229_v63 = vpop.permute.xlu2 %1228 }
 0xefd   :  { %v1231_v17 = vadd.f32 %v1229_v63, %v1172_v32 }
 0xeff   :  { %1739 = vtanh.f32 %v1231_v17 }
 0xf04   :  { %v1318_v8 = vpop.permute.xlu2 %1317 }
 0xf05   :  { %v1740_v11 = vpop.eup %1739  ;;  %v1320_v12 = vadd.f32 %v1318_v8, %v1174_v5 }
 0xf06   :  { %1235 = vrot.lane.b32.xlu1 %v1740_v11, %s2004_s22 }
 0xf07   :  { %1741 = vtanh.f32 %v1320_v12 }
 0xf08   :  { %1743 = vpow2.f32 %v1610_v20 }
 0xf0d   :  { %v1742_v15 = vpop.eup %1741 }
 0xf0e   :  { %1324 = vrot.lane.b32.xlu1 %v1742_v15, %s2004_s22  ;;  %v1744_v21 = vpop.eup %1743 }
 0xf0f   :  { %v1296_v53 = vadd.f32 1.0, %v1744_v21 }
 0xf11   :  { %1745 = vrcp.f32 %v1296_v53  ;;  %v1308_v26 = vand.u32 2147483648, %v1296_v53  ;;  %vm1302_vm3 = vweird.f32 %v1296_v53  ;;  %v1306_v60 = vand.u32 2147483647, %v1296_v53 }
 0xf13   :  { %v1309_v34 = vor.u32 1.1754944e-38, %v1308_v26  ;;  %vm1307_vm5 = vcmp.eq.f32.partialorder %v1306_v60, 8.507059e+37 }
 0xf17   :  { %v1746_v13 = vpop.eup %1745 }
 0xf18   :  { %v1298_v22 = vmul.f32 %v1746_v13, %v1296_v53  ;;  %vm1303_vm2 = vweird.f32 %v1746_v13 }
 0xf19   :  { %vm1304_vm4 = vmor %vm1302_vm3, %vm1303_vm2 }
 0xf1a   :  { %v1299_v23 = vsub.f32 1.0, %v1298_v22 }
 0xf1c   :  { %v1300_v25 = vmul.f32 %v1746_v13, %v1299_v23 }
 0xf1e   :  { %v1301_v27 = vadd.f32 %v1746_v13, %v1300_v25  ;;  %v1340_v25 = vld [vmem:[#allocation2 + $0x8] sm:$0x3] }
 0xf20   :  { %v1305_v33 = vsel %vm1304_vm4, %v1746_v13, %v1301_v27 }
 0xf21   :  { %v1310_v36 = vsel %vm1307_vm5, %v1309_v34, %v1305_v33 }
 0xf22   :  { %v1322_v14 = vsub.f32 1.0, %v1310_v36  ;;  %v1330_v4 = vmul.f32 %v1328_v40, %v1310_v36 }
 0xf78   :  { %v1236_v30 = vpop.permute.xlu1 %1235 }
 0xf79   :  { %v1238_v32 = vmul.f32 %v1236_v30, %v1233_v28 }
 0xf7b   :  { %v2353_v35 = vadd.f32 %v1241_v31, %v1238_v32 }
 0xf7d   :  { %v1341_v37 = vrot.slane %v2353_v35, 4 }
 0xf7f   :  { %1342 = vrot.lane.b32.xlu0 %v1341_v37, %s2004_s22 }
 0xf80   :  { %v1325_v1 = vpop.permute.xlu1 %1324 }
 0xf81   :  { %v1327_v7 = vmul.f32 %v1325_v1, %v1322_v14 }
 0xf83   :  { %v2358_v10 = vadd.f32 %v1330_v4, %v1327_v7 }
 0xf85   :  { %v1410_v0 = vrot.slane %v2358_v10, 2  ;;  %1337 = vst.msk [vmem:[#allocation13] sm:$0xc] %vm513_vm1, %v2358_v10 }
 0xf87   :  { %1613 = vmatmul.msk.f32.vlgmr.msra.gmra.mxu3 %vm195_vm15, %v1410_v0 }
 0xff1   :  { %v1343_v41 = vpop.permute.xlu0 %1342 }
 0xff2   :  { %1611 = vmatmul.msk.f32.vlgmr.msra.gmra.mxu2 %vm195_vm15, %v1343_v41 }
0x100a   :  { %v1430_v43 = vpop.f32.mrf.mxu3 }
0x100b   :  { %v1431_v24 = vadd.f32 %v2314_v48, %v1430_v43 }
0x100d   :  { %1477 = vrot.lane.b32.xlu1 %v1431_v24, %s2005_s23  ;;  %1434 = vrot.lane.b32.xlu0 %v1431_v24, %s2004_s22 }
0x1075   :  { %v1363_v9 = vpop.f32.mrf.mxu2 }
0x1076   :  { %v1364_v45 = vadd.f32 %v2321_v2, %v1363_v9 }
0x1078   :  { %v1367_v46 = vrot.slane %v1364_v45, 2 }
0x107a   :  { %1389 = vrot.lane.b32.xlu2 %v1367_v46, %s2003_s21  ;;  %v1369_v63 = vadd.f32 %v1367_v46, %v1338_v62 }
0x107c   :  { %v1612_v17 = vmul.f32 -1.442695, %v1369_v63 }
0x107f   :  { %v2372_v49 = vpop.permute.xlu0 %1434  ;;  %v1478_v6 = vpop.permute.xlu1 %1477 }
0x1080   :  { %v1437_v50 = vadd.f32 %v2372_v49, %v1339_v47  ;;  %v1457_v33 = vadd.f32 %v2372_v49, %v1340_v25 }
0x1082   :  { %v1614_v51 = vmul.f32 -1.442695, %v1437_v50  ;;  %v1615_v34 = vmul.f32 -1.442695, %v1457_v33 }
0x1084   :  { %1747 = vpow2.f32 %v1614_v51 }
0x108a   :  { %v1748_v52 = vpop.eup %1747 }
0x108b   :  { %v1441_v38 = vadd.f32 1.0, %v1748_v52 }
0x108d   :  { %1749 = vrcp.f32 %v1441_v38  ;;  %v1453_v55 = vand.u32 2147483648, %v1441_v38  ;;  %v1451_v2 = vand.u32 2147483647, %v1441_v38  ;;  %vm1447_vm6 = vweird.f32 %v1441_v38 }
0x108e   :  { %1751 = vpow2.f32 %v1612_v17 }
0x108f   :  { %v1454_v58 = vor.u32 1.1754944e-38, %v1453_v55  ;;  %vm1452_vm8 = vcmp.eq.f32.partialorder %v1451_v2, 8.507059e+37 }
0x1093   :  { %v1750_v48 = vpop.eup %1749 }
0x1094   :  { %v1443_v39 = vmul.f32 %v1750_v48, %v1441_v38  ;;  %vm1448_vm15 = vweird.f32 %v1750_v48  ;;  %v1752_v5 = vpop.eup %1751 }
0x1095   :  { %vm1449_vm7 = vmor %vm1447_vm6, %vm1448_vm15  ;;  %v1373_v8 = vadd.f32 1.0, %v1752_v5 }
0x1096   :  { %v1444_v54 = vsub.f32 1.0, %v1443_v39 }
0x1097   :  { %1753 = vrcp.f32 %v1373_v8  ;;  %v1385_v21 = vand.u32 2147483648, %v1373_v8  ;;  %vm1379_vm10 = vweird.f32 %v1373_v8  ;;  %v1383_v53 = vand.u32 2147483647, %v1373_v8 }
0x1098   :  { %v1445_v56 = vmul.f32 %v1750_v48, %v1444_v54 }
0x1099   :  { %v1386_v22 = vor.u32 1.1754944e-38, %v1385_v21  ;;  %vm1384_vm12 = vcmp.eq.f32.partialorder %v1383_v53, 8.507059e+37 }
0x109a   :  { %v1446_v57 = vadd.f32 %v1750_v48, %v1445_v56 }
0x109c   :  { %v1450_v59 = vsel %vm1449_vm7, %v1750_v48, %v1446_v57 }
0x109d   :  { %v1455_v18 = vsel %vm1452_vm8, %v1454_v58, %v1450_v59  ;;  %v1754_v11 = vpop.eup %1753 }
0x109e   :  { %v1480_v61 = vmul.f32 %v1478_v6, %v1455_v18  ;;  %v1375_v12 = vmul.f32 %v1754_v11, %v1373_v8  ;;  %vm1380_vm9 = vweird.f32 %v1754_v11 }
0x109f   :  { %vm1381_vm11 = vmor %vm1379_vm10, %vm1380_vm9 }
0x10a0   :  { %1482 = vrot.lane.b32.xlu0 %v1480_v61, %s2003_s21  ;;  %v1376_v15 = vsub.f32 1.0, %v1375_v12 }
0x10a2   :  { %v1377_v19 = vmul.f32 %v1754_v11, %v1376_v15 }
0x10a4   :  { %v1378_v20 = vadd.f32 %v1754_v11, %v1377_v19 }
0x10a6   :  { %v1382_v13 = vsel %vm1381_vm11, %v1754_v11, %v1378_v20 }
0x10a8   :  { %510 = vrot.lane.b32.xlu0 %v2209_v42, %s2004_s22  ;;  %v2380_v42 = vsel %vm1384_vm12, %v1386_v22, %v1382_v13 }
0x10a9   :  { %v1399_v10 = vsub.f32 1.0, %v2380_v42 }
0x10b0   :  { %1167 = vrot.lane.b32.xlu0 %v2331_v44, %s2004_s22 }
0x10d4   :  { %v1390_v23 = vpop.permute.xlu2 %1389 }
0x10d5   :  { %v1392_v44 = vmul.f32 %v1390_v23, %v2380_v42 }
0x10d7   :  { %1394 = vrot.lane.b32.xlu2 %v1392_v44, %s2003_s21 }
0x1112   :  { %v1483_v27 = vpop.permute.xlu0 %1482 }
0x1113   :  { %v1485_v26 = vadd.f32 %v1483_v27, %v1340_v25 }
0x1115   :  { %1755 = vtanh.f32 %v1485_v26 }
0x111a   :  { %v511_v28 = vpop.permute.xlu0 %510 }
0x111b   :  { %v1756_v29 = vpop.eup %1755  ;;  %514 = vst.msk [vmem:[#allocation12] sm:$0xc] %vm513_vm1, %v511_v28 }
0x111c   :  { %1489 = vrot.lane.b32.xlu2 %v1756_v29, %s2004_s22 }
0x1122   :  { %v1168_v60 = vpop.permute.xlu0 %1167 }
0x1123   :  { %1170 = vst.msk [vmem:[#allocation12 + $0x8] sm:$0xc] %vm513_vm1, %v1168_v60 }
0x1124   :  { %842 = vrot.lane.b32.xlu2 %v2272_v3, %s2004_s22 }
0x1131   :  { %v1395_v30 = vpop.permute.xlu2 %1394 }
0x1132   :  { %v1397_v31 = vadd.f32 %v1395_v30, %v1338_v62 }
0x1134   :  { %1757 = vtanh.f32 %v1397_v31 }
0x1135   :  { %1759 = vpow2.f32 %v1615_v34 }
0x113a   :  { %v1758_v32 = vpop.eup %1757 }
0x113b   :  { %1401 = vrot.lane.b32.xlu1 %v1758_v32, %s2004_s22  ;;  %v1760_v36 = vpop.eup %1759 }
0x113c   :  { %v1461_v37 = vadd.f32 1.0, %v1760_v36 }
0x113e   :  { %1761 = vrcp.f32 %v1461_v37  ;;  %v1473_v7 = vand.u32 2147483648, %v1461_v37  ;;  %vm1467_vm2 = vweird.f32 %v1461_v37  ;;  %v1471_v41 = vand.u32 2147483647, %v1461_v37 }
0x1140   :  { %vm1472_vm4 = vcmp.eq.f32.partialorder %v1471_v41, 8.507059e+37 }
0x1143   :  { %678 = vrot.lane.b32.xlu1 %v2240_v16, %s2004_s22  ;;  %v1474_v16 = vor.u32 1.1754944e-38, %v1473_v7 }
0x1144   :  { %v1762_v3 = vpop.eup %1761 }
0x1145   :  { %v1463_v14 = vmul.f32 %v1762_v3, %v1461_v37  ;;  %vm1468_vm1 = vweird.f32 %v1762_v3 }
0x1146   :  { %vm1469_vm3 = vmor %vm1467_vm2, %vm1468_vm1 }
0x1147   :  { %v1464_v40 = vsub.f32 1.0, %v1463_v14 }
0x1149   :  { %v1465_v1 = vmul.f32 %v1762_v3, %v1464_v40 }
0x114b   :  { %1333 = vrot.lane.b32.xlu1 %v2353_v35, %s2004_s22  ;;  %v1466_v4 = vadd.f32 %v1762_v3, %v1465_v1 }
0x114d   :  { %v1470_v43 = vsel %vm1469_vm3, %v1762_v3, %v1466_v4 }
0x114e   :  { %v1475_v24 = vsel %vm1472_vm4, %v1474_v16, %v1470_v43 }
0x114f   :  { %v1487_v9 = vsub.f32 1.0, %v1475_v24  ;;  %v1494_v46 = vmul.f32 %v1475_v24, %v1410_v0  ;;  %v1405_v0 = vrot.slane %v2353_v35, 6 }
0x1151   :  { %v1407_v52 = vmul.f32 %v1405_v0, %v2380_v42 }
0x1176   :  { %v1490_v45 = vpop.permute.xlu2 %1489 }
0x1177   :  { %v1492_v47 = vmul.f32 %v1490_v45, %v1487_v9 }
0x1179   :  { %v1495_v49 = vadd.f32 %v1494_v46, %v1492_v47 }
0x117b   :  { %1501 = vst.msk [vmem:[#allocation13] sm:$0x3] %vm348_vm0, %v1495_v49 }
0x117c   :  { %1503 = vst.msk [vmem:[#allocation16] sm:$0x3] %vm348_vm0, %v1495_v49  ;;  %1529 = dma.vmem_to_hbm [thread:$0]  %s1522_s11, 256, %s1524_s29, [#allocation14], %s1997_s1, %s1997_s1, %s1998_s28  }
0x117d   :  { %1551 = dma.vmem_to_hbm [thread:$0]  %s1547_s12, 32, %s1549_s14, [#allocation17]  }
0x117e   :  { %v843_v50 = vpop.permute.xlu2 %842 }
0x117f   :  { %845 = vst.msk [vmem:[#allocation12] sm:$0xc0] %vm350_vm14, %v843_v50 }
0x11ad   :  { %v1402_v51 = vpop.permute.xlu1 %1401 }
0x11ae   :  { %v1404_v38 = vmul.f32 %v1402_v51, %v1399_v10 }
0x11b0   :  { %v1408_v48 = vadd.f32 %v1407_v52, %v1404_v38 }
0x11b2   :  { %1497 = vrot.lane.b32.xlu2 %v1408_v48, %s2004_s22 }
0x11b5   :  { %v679_v39 = vpop.permute.xlu1 %678 }
0x11b6   :  { %681 = vst.msk [vmem:[#allocation12] sm:$0x30] %vm515_vm13, %v679_v39 }
0x11bd   :  { %v1334_v54 = vpop.permute.xlu1 %1333 }
0x11be   :  { %1336 = vst.msk [vmem:[#allocation12 + $0x8] sm:$0x30] %vm515_vm13, %v1334_v54 }
0x120c   :  { %v1498_v35 = vpop.permute.xlu2 %1497 }
0x120d   :  { %1500 = vst.msk [vmem:[#allocation12 + $0x8] sm:$0xc0] %vm350_vm14, %v1498_v35 }
0x120e   :  { %1502 = vst.msk [vmem:[#allocation15 - $0x6] sm:$0xc0] %vm350_vm14, %v1498_v35  ;;  %1516 = dma.vmem_to_hbm [thread:$0]  %s1509_s10, 256, %s1511_s17, [#allocation5], %s1997_s1, %s1997_s1, %s1998_s28  }
0x120f   :  { %1540 = dma.vmem_to_hbm [thread:$0]  %s1536_s2, 32, %s1538_s20, [#allocation14]  }
0x1210   :  { %1987 = dma.done.wait [#allocation5], 256  }
0x1211   :  { %1988 = vsyncadd [#allocation5], 4294967040 }
0x1212   :  { %1989 = dma.done.wait [#allocation14], 288  }
0x1213   :  { %1990 = vsyncadd [#allocation14], 4294967008 }
0x1214   :  { %1991 = dma.done.wait [#allocation17], 32  }
0x1215   :  { %1992 = vsyncadd [#allocation17], 4294967264 }
0x1216   :  { %1568 = vsyncpa [#allocation4], 1 }
0x1217   :  { %1569 = vsyncpa [#allocation7], 1 }
0x1218   :  { %1570 = vsyncpa [#allocation10], 1 }
0x1219   :  { %1571 = vsyncpa [#allocation5], 1 }
0x121a   :  { %1572 = vsyncpa [#allocation14], 1 }
0x121b   :  { %1573 = vsyncpa [#allocation17], 1 }

</bundles_post_ra>
